<compile_context>
chip_gen: v7x
topology: tpu7x:2x2x1
jax: 0.10.0
libtpu: 0.0.40
codegen_flags: <defaults>
</compile_context>

<pallas_src>
import jax
import jax.numpy as jnp
from jax.experimental import pallas as pl
from jax.experimental.pallas import tpu as pltpu


# --------------------------- fused HANConv kernel ---------------------------

def _build_hanconv_kernel(node_types, edge_types, n_nodes, heads, out_channels):
    H = heads
    F_out = out_channels
    D = F_out // H
    nt_list = tuple(node_types)
    et_list = tuple(edge_types)
    n_in = 3 * len(nt_list) + 3 * len(et_list) + 3

    # every node type must receive at least one edge type (PyG would return
    # None otherwise, which the stacked second layer could not consume)
    for nt in nt_list:
        assert any(et[2] == nt for et in et_list), f"no incoming edges for {nt}"

    def kernel(*refs):
        in_refs, out_refs = refs[:n_in], refs[n_in:]
        idx = 0
        x_ref, w_ref, b_ref = {}, {}, {}
        for nt in nt_list:
            x_ref[nt], w_ref[nt], b_ref[nt] = in_refs[idx:idx + 3]
            idx += 3
        a_src_ref, a_dst_ref, mask_ref = [], [], []
        for _ in et_list:
            a_src_ref.append(in_refs[idx])
            a_dst_ref.append(in_refs[idx + 1])
            mask_ref.append(in_refs[idx + 2])
            idx += 3
        klw_ref, klb_ref, q_ref = in_refs[idx:idx + 3]

        # 1) node-type projections (one MXU dot each, stays in VMEM)
        x_proj = {}
        for nt in nt_list:
            x_proj[nt] = jnp.dot(x_ref[nt][...], w_ref[nt][...],
                                 preferred_element_type=jnp.float32) + b_ref[nt][...]

        # 2) node-level attention per edge type (all heads stacked along rows)
        edge_out = {nt: [] for nt in nt_list}
        for ei, (src_t, _, dst_t) in enumerate(et_list):
            xs, xd = x_proj[src_t], x_proj[dst_t]
            Ns, Nd = n_nodes[src_t], n_nodes[dst_t]
            # (x.view(N,H,D) * att).sum(-1) == x_proj @ A  (A built host-side)
            alpha_src = jnp.dot(xs, a_src_ref[ei][...],
                                preferred_element_type=jnp.float32)      # (Ns, H)
            alpha_dst = jnp.dot(xd, a_dst_ref[ei][...],
                                preferred_element_type=jnp.float32)      # (Nd, H)
            alpha_src_t = alpha_src.T                                    # (H, Ns)
            # all-head score matrix, heads along the sublane axis: (H*Nd, Ns)
            s = jnp.concatenate(
                [alpha_dst[:, h:h + 1] + alpha_src_t[h:h + 1, :] for h in range(H)],
                axis=0)
            s = jnp.where(s > 0, s, 0.2 * s)                  # leaky_relu(0.2)
            mask = mask_ref[ei][...]                          # (Nd, Ns)
            mask_h = jnp.concatenate([mask] * H, axis=0)      # (H*Nd, Ns)
            s = jnp.where(mask_h > 0, s, -1e30)               # only real edges
            m = jnp.max(s, axis=-1, keepdims=True)
            p = jnp.exp(s - m) * mask_h
            denom = jnp.sum(p, axis=-1, keepdims=True)
            attn = p / jnp.maximum(denom, 1e-30)              # rows w/o edges -> 0
            # ONE MXU contraction for all heads, then pick each head's block
            agg = jnp.dot(attn, xs, preferred_element_type=jnp.float32)  # (H*Nd, F_out)
            out = jnp.concatenate(
                [agg[h * Nd:(h + 1) * Nd, h * D:(h + 1) * D] for h in range(H)],
                axis=-1)                                      # (Nd, F_out)
            edge_out[dst_t].append(jnp.maximum(out, 0.0))     # F.relu after propagate

        # 3) semantic-level attention ("group"), fused in the same kernel
        for oi, nt in enumerate(nt_list):
            outs = edge_out[nt]
            R, N = len(outs), n_nodes[nt]
            big = outs[0] if R == 1 else jnp.concatenate(outs, axis=0)   # (R*N, F_out)
            k = jnp.tanh(jnp.dot(big, klw_ref[...],
                                 preferred_element_type=jnp.float32) + klb_ref[...])
            scores = []
            for r in range(R):
                k_mean = jnp.mean(k[r * N:(r + 1) * N, :], axis=0, keepdims=True)
                scores.append(jnp.sum(k_mean * q_ref[...], axis=-1, keepdims=True))
            m = scores[0]
            for r in range(1, R):
                m = jnp.maximum(m, scores[r])
            exps = [jnp.exp(sc - m) for sc in scores]
            denom = exps[0]
            for r in range(1, R):
                denom = denom + exps[r]
            res = (exps[0] / denom) * outs[0]
            for r in range(1, R):
                res = res + (exps[r] / denom) * outs[r]
            out_refs[oi][...] = res

    return kernel, n_in


# ------------------------------ JAX-side glue ------------------------------

def _att_to_matrix(att, heads, d_head):
    # att: (1, H, D) -> (H*D, H) block matrix so that
    #   x_proj @ A == (x_proj.reshape(N, H, D) * att).sum(-1)
    eye = jnp.eye(heads, dtype=att.dtype)
    return (att.reshape(heads, d_head, 1) *
            eye.reshape(heads, 1, heads)).reshape(heads * d_head, heads)


def han_conv(x_dict, mask_dict, params, node_types, edge_types, heads,
             out_channels):
    nt_list = tuple(node_types)
    et_list = tuple(edge_types)
    n_nodes = {nt: x_dict[nt].shape[0] for nt in nt_list}
    F_out = out_channels
    D = F_out // heads

    kernel, _ = _build_hanconv_kernel(nt_list, et_list, n_nodes, heads, F_out)

    vmem = pl.BlockSpec(memory_space=pltpu.MemorySpace.VMEM)
    args = []
    for nt in nt_list:
        args += [x_dict[nt], params['proj_w'][nt],
                 params['proj_b'][nt].reshape(1, F_out)]
    for et in et_list:
        key = '__'.join(et)
        args += [_att_to_matrix(params['att_src'][key], heads, D),
                 _att_to_matrix(params['att_dst'][key], heads, D),
                 mask_dict[et]]
    args += [params['k_lin_w'], params['k_lin_b'].reshape(1, F_out), params['q']]

    outs = pl.pallas_call(
        kernel,
        out_shape=tuple(jax.ShapeDtypeStruct((n_nodes[nt], F_out), jnp.float32)
                        for nt in nt_list),
        in_specs=[vmem] * len(args),
        out_specs=tuple(vmem for _ in nt_list),
    )(*args)
    return {nt: outs[i] for i, nt in enumerate(nt_list)}


# ---------------------------- parameter init ----------------------------

def init_hanconv_params(key, in_channels, out_channels, heads, node_types,
                        edge_types):
    D = out_channels // heads
    n_keys = 2 * len(node_types) + 2 * len(edge_types) + 3
    keys = iter(jax.random.split(key, n_keys))
    params = {
        'proj_w': {nt: 0.1 * jax.random.normal(
            next(keys), (in_channels, out_channels), jnp.float32)
            for nt in node_types},
        'proj_b': {nt: 0.1 * jax.random.normal(
            next(keys), (out_channels,), jnp.float32)
            for nt in node_types},
        'att_src': {'__'.join(et): 0.1 * jax.random.normal(
            next(keys), (1, heads, D), jnp.float32)
            for et in edge_types},
        'att_dst': {'__'.join(et): 0.1 * jax.random.normal(
            next(keys), (1, heads, D), jnp.float32)
            for et in edge_types},
        'k_lin_w': 0.1 * jax.random.normal(
            next(keys), (out_channels, out_channels), jnp.float32),
        'k_lin_b': 0.1 * jax.random.normal(
            next(keys), (out_channels,), jnp.float32),
        'q': 0.1 * jax.random.normal(
            next(keys), (1, out_channels), jnp.float32),
    }
    return params


# ---------------------------- main ----------------------------

if __name__ == "__main__":
    key = jax.random.PRNGKey(0)

    # synthetic heterogeneous graph metadata (graph.metadata())
    node_types = ['author', 'paper']
    edge_types = [('author', 'writes', 'paper'),
                  ('paper', 'rev_writes', 'author'),
                  ('author', 'co_author', 'author')]
    n_nodes = {'author': 8, 'paper': 16}

    in_channels, hidden_channels, out_channels = 16, 32, 8  # heads 8 -> D=4, heads 4 -> D=2

    k_x, k_e, k_p1, k_p2 = jax.random.split(key, 4)

    kx = jax.random.split(k_x, len(node_types))
    x_dict = {nt: jax.random.normal(kx[i], (n_nodes[nt], in_channels),
                                    jnp.float32)
              for i, nt in enumerate(node_types)}

    # edge_index_dict -> dense adjacency masks (unique (src,dst) pairs),
    # ensuring every destination node has at least one incoming edge so the
    # masked-dense softmax matches PyG's scatter softmax exactly.
    # TODO(synk): the dense O(N_src*N_dst) mask only works for small graphs;
    # large graphs need a dst-tiled grid with scalar-prefetched CSR offsets.
    ke = jax.random.split(k_e, len(edge_types))
    mask_dict = {}
    for i, et in enumerate(edge_types):
        src_t, _, dst_t = et
        ns, nd = n_nodes[src_t], n_nodes[dst_t]
        m = (jax.random.uniform(ke[i], (nd, ns)) < 0.3).astype(jnp.float32)
        rows = jnp.arange(nd)
        m = m.at[rows, rows % ns].set(1.0)
        mask_dict[et] = m

    params1 = init_hanconv_params(k_p1, in_channels, hidden_channels, 8,
                                  node_types, edge_types)
    params2 = init_hanconv_params(k_p2, hidden_channels, out_channels, 4,
                                  node_types, edge_types)

    # HAN.forward: conv1 -> conv2 -> x['author']   (one pallas_call per layer)
    h = han_conv(x_dict, mask_dict, params1, node_types, edge_types,
                 heads=8, out_channels=hidden_channels)
    h = han_conv(h, mask_dict, params2, node_types, edge_types,
                 heads=4, out_channels=out_channels)
    out = h['author']

    jax.block_until_ready(out)
    assert out.shape == (n_nodes['author'], out_channels)
    assert bool(jnp.all(jnp.isfinite(out)))
    # TODO(synk): dropout is a no-op (HANConv default p=0.0), so it is omitted.
    print("KERNEL_OK")
</pallas_src>

<mosaic_0001>
module attributes {stable_mosaic.version = 11 : i64} {
  func.func @kernel(%arg0: memref<8x16xf32, #tpu.memory_space<vmem>>, %arg1: memref<16x32xf32, #tpu.memory_space<vmem>>, %arg2: memref<1x32xf32, #tpu.memory_space<vmem>>, %arg3: memref<16x16xf32, #tpu.memory_space<vmem>>, %arg4: memref<16x32xf32, #tpu.memory_space<vmem>>, %arg5: memref<1x32xf32, #tpu.memory_space<vmem>>, %arg6: memref<32x8xf32, #tpu.memory_space<vmem>>, %arg7: memref<32x8xf32, #tpu.memory_space<vmem>>, %arg8: memref<16x8xf32, #tpu.memory_space<vmem>>, %arg9: memref<32x8xf32, #tpu.memory_space<vmem>>, %arg10: memref<32x8xf32, #tpu.memory_space<vmem>>, %arg11: memref<8x16xf32, #tpu.memory_space<vmem>>, %arg12: memref<32x8xf32, #tpu.memory_space<vmem>>, %arg13: memref<32x8xf32, #tpu.memory_space<vmem>>, %arg14: memref<8x8xf32, #tpu.memory_space<vmem>>, %arg15: memref<32x32xf32, #tpu.memory_space<vmem>>, %arg16: memref<1x32xf32, #tpu.memory_space<vmem>>, %arg17: memref<1x32xf32, #tpu.memory_space<vmem>>, %arg18: memref<8x32xf32, #tpu.memory_space<vmem>>, %arg19: memref<16x32xf32, #tpu.memory_space<vmem>>) attributes {dimension_semantics = [], scalar_prefetch = 0 : i64, scratch_operands = 0 : i64, tpu.core_type = #tpu.core_type<tc>} {
    %c0 = arith.constant 0 : index
    %c0_0 = arith.constant 0 : index
    %0 = vector.load %arg0[%c0, %c0_0] : memref<8x16xf32, #tpu.memory_space<vmem>>, vector<8x16xf32>
    %c0_1 = arith.constant 0 : index
    %c0_2 = arith.constant 0 : index
    %1 = vector.load %arg1[%c0_1, %c0_2] : memref<16x32xf32, #tpu.memory_space<vmem>>, vector<16x32xf32>
    %cst = arith.constant dense<0.000000e+00> : vector<8x32xf32>
    %2 = tpu.matmul %0, %1, %cst {dimension_numbers = #tpu.dot_dimension_numbers<[1], [0], [0], [1], [0, 0, 1, 1], [], []>} : vector<8x16xf32>, vector<16x32xf32>, vector<8x32xf32> -> vector<8x32xf32>
    %c0_3 = arith.constant 0 : index
    %c0_4 = arith.constant 0 : index
    %3 = vector.load %arg2[%c0_3, %c0_4] : memref<1x32xf32, #tpu.memory_space<vmem>>, vector<1x32xf32>
    %4 = vector.broadcast %3 : vector<1x32xf32> to vector<8x32xf32>
    %5 = arith.addf %2, %4 : vector<8x32xf32>
    %c0_5 = arith.constant 0 : index
    %c0_6 = arith.constant 0 : index
    %6 = vector.load %arg3[%c0_5, %c0_6] : memref<16x16xf32, #tpu.memory_space<vmem>>, vector<16x16xf32>
    %c0_7 = arith.constant 0 : index
    %c0_8 = arith.constant 0 : index
    %7 = vector.load %arg4[%c0_7, %c0_8] : memref<16x32xf32, #tpu.memory_space<vmem>>, vector<16x32xf32>
    %cst_9 = arith.constant dense<0.000000e+00> : vector<16x32xf32>
    %8 = tpu.matmul %6, %7, %cst_9 {dimension_numbers = #tpu.dot_dimension_numbers<[1], [0], [0], [1], [0, 0, 1, 1], [], []>} : vector<16x16xf32>, vector<16x32xf32>, vector<16x32xf32> -> vector<16x32xf32>
    %c0_10 = arith.constant 0 : index
    %c0_11 = arith.constant 0 : index
    %9 = vector.load %arg5[%c0_10, %c0_11] : memref<1x32xf32, #tpu.memory_space<vmem>>, vector<1x32xf32>
    %10 = vector.broadcast %9 : vector<1x32xf32> to vector<16x32xf32>
    %11 = arith.addf %8, %10 : vector<16x32xf32>
    %c0_12 = arith.constant 0 : index
    %c0_13 = arith.constant 0 : index
    %12 = vector.load %arg6[%c0_12, %c0_13] : memref<32x8xf32, #tpu.memory_space<vmem>>, vector<32x8xf32>
    %cst_14 = arith.constant dense<0.000000e+00> : vector<8x8xf32>
    %13 = tpu.matmul %5, %12, %cst_14 {dimension_numbers = #tpu.dot_dimension_numbers<[1], [0], [0], [1], [0, 0, 1, 1], [], []>} : vector<8x32xf32>, vector<32x8xf32>, vector<8x8xf32> -> vector<8x8xf32>
    %c0_15 = arith.constant 0 : index
    %c0_16 = arith.constant 0 : index
    %14 = vector.load %arg7[%c0_15, %c0_16] : memref<32x8xf32, #tpu.memory_space<vmem>>, vector<32x8xf32>
    %cst_17 = arith.constant dense<0.000000e+00> : vector<16x8xf32>
    %15 = tpu.matmul %11, %14, %cst_17 {dimension_numbers = #tpu.dot_dimension_numbers<[1], [0], [0], [1], [0, 0, 1, 1], [], []>} : vector<16x32xf32>, vector<32x8xf32>, vector<16x8xf32> -> vector<16x8xf32>
    %16 = tpu.transpose %13, [1, 0] : vector<8x8xf32> -> vector<8x8xf32>
    %17 = vector.extract_strided_slice %15 {offsets = [0, 0], sizes = [16, 1], strides = [1, 1]} : vector<16x8xf32> to vector<16x1xf32>
    %18 = vector.extract_strided_slice %16 {offsets = [0, 0], sizes = [1, 8], strides = [1, 1]} : vector<8x8xf32> to vector<1x8xf32>
    %19 = vector.broadcast %17 : vector<16x1xf32> to vector<16x8xf32>
    %20 = vector.broadcast %18 : vector<1x8xf32> to vector<16x8xf32>
    %21 = arith.addf %19, %20 : vector<16x8xf32>
    %22 = vector.extract_strided_slice %15 {offsets = [0, 1], sizes = [16, 1], strides = [1, 1]} : vector<16x8xf32> to vector<16x1xf32>
    %23 = vector.extract_strided_slice %16 {offsets = [1, 0], sizes = [1, 8], strides = [1, 1]} : vector<8x8xf32> to vector<1x8xf32>
    %24 = vector.broadcast %22 : vector<16x1xf32> to vector<16x8xf32>
    %25 = vector.broadcast %23 : vector<1x8xf32> to vector<16x8xf32>
    %26 = arith.addf %24, %25 : vector<16x8xf32>
    %27 = vector.extract_strided_slice %15 {offsets = [0, 2], sizes = [16, 1], strides = [1, 1]} : vector<16x8xf32> to vector<16x1xf32>
    %28 = vector.extract_strided_slice %16 {offsets = [2, 0], sizes = [1, 8], strides = [1, 1]} : vector<8x8xf32> to vector<1x8xf32>
    %29 = vector.broadcast %27 : vector<16x1xf32> to vector<16x8xf32>
    %30 = vector.broadcast %28 : vector<1x8xf32> to vector<16x8xf32>
    %31 = arith.addf %29, %30 : vector<16x8xf32>
    %32 = vector.extract_strided_slice %15 {offsets = [0, 3], sizes = [16, 1], strides = [1, 1]} : vector<16x8xf32> to vector<16x1xf32>
    %33 = vector.extract_strided_slice %16 {offsets = [3, 0], sizes = [1, 8], strides = [1, 1]} : vector<8x8xf32> to vector<1x8xf32>
    %34 = vector.broadcast %32 : vector<16x1xf32> to vector<16x8xf32>
    %35 = vector.broadcast %33 : vector<1x8xf32> to vector<16x8xf32>
    %36 = arith.addf %34, %35 : vector<16x8xf32>
    %37 = vector.extract_strided_slice %15 {offsets = [0, 4], sizes = [16, 1], strides = [1, 1]} : vector<16x8xf32> to vector<16x1xf32>
    %38 = vector.extract_strided_slice %16 {offsets = [4, 0], sizes = [1, 8], strides = [1, 1]} : vector<8x8xf32> to vector<1x8xf32>
    %39 = vector.broadcast %37 : vector<16x1xf32> to vector<16x8xf32>
    %40 = vector.broadcast %38 : vector<1x8xf32> to vector<16x8xf32>
    %41 = arith.addf %39, %40 : vector<16x8xf32>
    %42 = vector.extract_strided_slice %15 {offsets = [0, 5], sizes = [16, 1], strides = [1, 1]} : vector<16x8xf32> to vector<16x1xf32>
    %43 = vector.extract_strided_slice %16 {offsets = [5, 0], sizes = [1, 8], strides = [1, 1]} : vector<8x8xf32> to vector<1x8xf32>
    %44 = vector.broadcast %42 : vector<16x1xf32> to vector<16x8xf32>
    %45 = vector.broadcast %43 : vector<1x8xf32> to vector<16x8xf32>
    %46 = arith.addf %44, %45 : vector<16x8xf32>
    %47 = vector.extract_strided_slice %15 {offsets = [0, 6], sizes = [16, 1], strides = [1, 1]} : vector<16x8xf32> to vector<16x1xf32>
    %48 = vector.extract_strided_slice %16 {offsets = [6, 0], sizes = [1, 8], strides = [1, 1]} : vector<8x8xf32> to vector<1x8xf32>
    %49 = vector.broadcast %47 : vector<16x1xf32> to vector<16x8xf32>
    %50 = vector.broadcast %48 : vector<1x8xf32> to vector<16x8xf32>
    %51 = arith.addf %49, %50 : vector<16x8xf32>
    %52 = vector.extract_strided_slice %15 {offsets = [0, 7], sizes = [16, 1], strides = [1, 1]} : vector<16x8xf32> to vector<16x1xf32>
    %53 = vector.extract_strided_slice %16 {offsets = [7, 0], sizes = [1, 8], strides = [1, 1]} : vector<8x8xf32> to vector<1x8xf32>
    %54 = vector.broadcast %52 : vector<16x1xf32> to vector<16x8xf32>
    %55 = vector.broadcast %53 : vector<1x8xf32> to vector<16x8xf32>
    %56 = arith.addf %54, %55 : vector<16x8xf32>
    %57 = tpu.concatenate %21, %26, %31, %36, %41, %46, %51, %56 in 0 : vector<16x8xf32>, vector<16x8xf32>, vector<16x8xf32>, vector<16x8xf32>, vector<16x8xf32>, vector<16x8xf32>, vector<16x8xf32>, vector<16x8xf32> -> vector<128x8xf32>
    %cst_18 = arith.constant 0.000000e+00 : f32
    %58 = vector.broadcast %cst_18 : f32 to vector<128x8xf32>
    %59 = arith.cmpf ogt, %57, %58 : vector<128x8xf32>
    %cst_19 = arith.constant 2.000000e-01 : f32
    %60 = vector.broadcast %cst_19 : f32 to vector<128x8xf32>
    %61 = arith.mulf %60, %57 : vector<128x8xf32>
    %62 = arith.select %59, %57, %61 : vector<128x8xi1>, vector<128x8xf32>
    %c0_20 = arith.constant 0 : index
    %c0_21 = arith.constant 0 : index
    %63 = vector.load %arg8[%c0_20, %c0_21] : memref<16x8xf32, #tpu.memory_space<vmem>>, vector<16x8xf32>
    %64 = tpu.concatenate %63, %63, %63, %63, %63, %63, %63, %63 in 0 : vector<16x8xf32>, vector<16x8xf32>, vector<16x8xf32>, vector<16x8xf32>, vector<16x8xf32>, vector<16x8xf32>, vector<16x8xf32>, vector<16x8xf32> -> vector<128x8xf32>
    %cst_22 = arith.constant 0.000000e+00 : f32
    %65 = vector.broadcast %cst_22 : f32 to vector<128x8xf32>
    %66 = arith.cmpf ogt, %64, %65 : vector<128x8xf32>
    %cst_23 = arith.constant -1.000000e+30 : f32
    %67 = vector.broadcast %cst_23 : f32 to vector<128x8xf32>
    %68 = arith.select %66, %62, %67 : vector<128x8xi1>, vector<128x8xf32>
    %cst_24 = arith.constant dense<0xFF800000> : vector<128xf32>
    %69 = vector.multi_reduction <maximumf>, %68, %cst_24 [1] : vector<128x8xf32> to vector<128xf32>
    %70 = vector.shape_cast %69 : vector<128xf32> to vector<128x1xf32>
    %71 = vector.broadcast %70 : vector<128x1xf32> to vector<128x8xf32>
    %72 = arith.subf %68, %71 : vector<128x8xf32>
    %73 = math.exp %72 : vector<128x8xf32>
    %74 = arith.mulf %73, %64 : vector<128x8xf32>
    %cst_25 = arith.constant dense<0.000000e+00> : vector<128xf32>
    %75 = vector.multi_reduction <add>, %74, %cst_25 [1] : vector<128x8xf32> to vector<128xf32>
    %76 = vector.shape_cast %75 : vector<128xf32> to vector<128x1xf32>
    %cst_26 = arith.constant 1.000000e-30 : f32
    %77 = vector.broadcast %cst_26 : f32 to vector<128x1xf32>
    %78 = arith.maximumf %76, %77 : vector<128x1xf32>
    %79 = vector.broadcast %78 : vector<128x1xf32> to vector<128x8xf32>
    %80 = arith.divf %74, %79 : vector<128x8xf32>
    %cst_27 = arith.constant dense<0.000000e+00> : vector<128x32xf32>
    %81 = tpu.matmul %80, %5, %cst_27 {dimension_numbers = #tpu.dot_dimension_numbers<[1], [0], [0], [1], [0, 0, 1, 1], [], []>} : vector<128x8xf32>, vector<8x32xf32>, vector<128x32xf32> -> vector<128x32xf32>
    %82 = vector.extract_strided_slice %81 {offsets = [0, 0], sizes = [16, 4], strides = [1, 1]} : vector<128x32xf32> to vector<16x4xf32>
    %83 = vector.extract_strided_slice %81 {offsets = [16, 4], sizes = [16, 4], strides = [1, 1]} : vector<128x32xf32> to vector<16x4xf32>
    %84 = vector.extract_strided_slice %81 {offsets = [32, 8], sizes = [16, 4], strides = [1, 1]} : vector<128x32xf32> to vector<16x4xf32>
    %85 = vector.extract_strided_slice %81 {offsets = [48, 12], sizes = [16, 4], strides = [1, 1]} : vector<128x32xf32> to vector<16x4xf32>
    %86 = vector.extract_strided_slice %81 {offsets = [64, 16], sizes = [16, 4], strides = [1, 1]} : vector<128x32xf32> to vector<16x4xf32>
    %87 = vector.extract_strided_slice %81 {offsets = [80, 20], sizes = [16, 4], strides = [1, 1]} : vector<128x32xf32> to vector<16x4xf32>
    %88 = vector.extract_strided_slice %81 {offsets = [96, 24], sizes = [16, 4], strides = [1, 1]} : vector<128x32xf32> to vector<16x4xf32>
    %89 = vector.extract_strided_slice %81 {offsets = [112, 28], sizes = [16, 4], strides = [1, 1]} : vector<128x32xf32> to vector<16x4xf32>
    %90 = tpu.concatenate %82, %83, %84, %85, %86, %87, %88, %89 in 1 : vector<16x4xf32>, vector<16x4xf32>, vector<16x4xf32>, vector<16x4xf32>, vector<16x4xf32>, vector<16x4xf32>, vector<16x4xf32>, vector<16x4xf32> -> vector<16x32xf32>
    %cst_28 = arith.constant 0.000000e+00 : f32
    %91 = vector.broadcast %cst_28 : f32 to vector<16x32xf32>
    %92 = arith.maximumf %90, %91 : vector<16x32xf32>
    %c0_29 = arith.constant 0 : index
    %c0_30 = arith.constant 0 : index
    %93 = vector.load %arg9[%c0_29, %c0_30] : memref<32x8xf32, #tpu.memory_space<vmem>>, vector<32x8xf32>
    %cst_31 = arith.constant dense<0.000000e+00> : vector<16x8xf32>
    %94 = tpu.matmul %11, %93, %cst_31 {dimension_numbers = #tpu.dot_dimension_numbers<[1], [0], [0], [1], [0, 0, 1, 1], [], []>} : vector<16x32xf32>, vector<32x8xf32>, vector<16x8xf32> -> vector<16x8xf32>
    %c0_32 = arith.constant 0 : index
    %c0_33 = arith.constant 0 : index
    %95 = vector.load %arg10[%c0_32, %c0_33] : memref<32x8xf32, #tpu.memory_space<vmem>>, vector<32x8xf32>
    %cst_34 = arith.constant dense<0.000000e+00> : vector<8x8xf32>
    %96 = tpu.matmul %5, %95, %cst_34 {dimension_numbers = #tpu.dot_dimension_numbers<[1], [0], [0], [1], [0, 0, 1, 1], [], []>} : vector<8x32xf32>, vector<32x8xf32>, vector<8x8xf32> -> vector<8x8xf32>
    %97 = tpu.transpose %94, [1, 0] : vector<16x8xf32> -> vector<8x16xf32>
    %98 = vector.extract_strided_slice %96 {offsets = [0, 0], sizes = [8, 1], strides = [1, 1]} : vector<8x8xf32> to vector<8x1xf32>
    %99 = vector.extract_strided_slice %97 {offsets = [0, 0], sizes = [1, 16], strides = [1, 1]} : vector<8x16xf32> to vector<1x16xf32>
    %100 = vector.broadcast %98 : vector<8x1xf32> to vector<8x16xf32>
    %101 = vector.broadcast %99 : vector<1x16xf32> to vector<8x16xf32>
    %102 = arith.addf %100, %101 : vector<8x16xf32>
    %103 = vector.extract_strided_slice %96 {offsets = [0, 1], sizes = [8, 1], strides = [1, 1]} : vector<8x8xf32> to vector<8x1xf32>
    %104 = vector.extract_strided_slice %97 {offsets = [1, 0], sizes = [1, 16], strides = [1, 1]} : vector<8x16xf32> to vector<1x16xf32>
    %105 = vector.broadcast %103 : vector<8x1xf32> to vector<8x16xf32>
    %106 = vector.broadcast %104 : vector<1x16xf32> to vector<8x16xf32>
    %107 = arith.addf %105, %106 : vector<8x16xf32>
    %108 = vector.extract_strided_slice %96 {offsets = [0, 2], sizes = [8, 1], strides = [1, 1]} : vector<8x8xf32> to vector<8x1xf32>
    %109 = vector.extract_strided_slice %97 {offsets = [2, 0], sizes = [1, 16], strides = [1, 1]} : vector<8x16xf32> to vector<1x16xf32>
    %110 = vector.broadcast %108 : vector<8x1xf32> to vector<8x16xf32>
    %111 = vector.broadcast %109 : vector<1x16xf32> to vector<8x16xf32>
    %112 = arith.addf %110, %111 : vector<8x16xf32>
    %113 = vector.extract_strided_slice %96 {offsets = [0, 3], sizes = [8, 1], strides = [1, 1]} : vector<8x8xf32> to vector<8x1xf32>
    %114 = vector.extract_strided_slice %97 {offsets = [3, 0], sizes = [1, 16], strides = [1, 1]} : vector<8x16xf32> to vector<1x16xf32>
    %115 = vector.broadcast %113 : vector<8x1xf32> to vector<8x16xf32>
    %116 = vector.broadcast %114 : vector<1x16xf32> to vector<8x16xf32>
    %117 = arith.addf %115, %116 : vector<8x16xf32>
    %118 = vector.extract_strided_slice %96 {offsets = [0, 4], sizes = [8, 1], strides = [1, 1]} : vector<8x8xf32> to vector<8x1xf32>
    %119 = vector.extract_strided_slice %97 {offsets = [4, 0], sizes = [1, 16], strides = [1, 1]} : vector<8x16xf32> to vector<1x16xf32>
    %120 = vector.broadcast %118 : vector<8x1xf32> to vector<8x16xf32>
    %121 = vector.broadcast %119 : vector<1x16xf32> to vector<8x16xf32>
    %122 = arith.addf %120, %121 : vector<8x16xf32>
    %123 = vector.extract_strided_slice %96 {offsets = [0, 5], sizes = [8, 1], strides = [1, 1]} : vector<8x8xf32> to vector<8x1xf32>
    %124 = vector.extract_strided_slice %97 {offsets = [5, 0], sizes = [1, 16], strides = [1, 1]} : vector<8x16xf32> to vector<1x16xf32>
    %125 = vector.broadcast %123 : vector<8x1xf32> to vector<8x16xf32>
    %126 = vector.broadcast %124 : vector<1x16xf32> to vector<8x16xf32>
    %127 = arith.addf %125, %126 : vector<8x16xf32>
    %128 = vector.extract_strided_slice %96 {offsets = [0, 6], sizes = [8, 1], strides = [1, 1]} : vector<8x8xf32> to vector<8x1xf32>
    %129 = vector.extract_strided_slice %97 {offsets = [6, 0], sizes = [1, 16], strides = [1, 1]} : vector<8x16xf32> to vector<1x16xf32>
    %130 = vector.broadcast %128 : vector<8x1xf32> to vector<8x16xf32>
    %131 = vector.broadcast %129 : vector<1x16xf32> to vector<8x16xf32>
    %132 = arith.addf %130, %131 : vector<8x16xf32>
    %133 = vector.extract_strided_slice %96 {offsets = [0, 7], sizes = [8, 1], strides = [1, 1]} : vector<8x8xf32> to vector<8x1xf32>
    %134 = vector.extract_strided_slice %97 {offsets = [7, 0], sizes = [1, 16], strides = [1, 1]} : vector<8x16xf32> to vector<1x16xf32>
    %135 = vector.broadcast %133 : vector<8x1xf32> to vector<8x16xf32>
    %136 = vector.broadcast %134 : vector<1x16xf32> to vector<8x16xf32>
    %137 = arith.addf %135, %136 : vector<8x16xf32>
    %138 = tpu.concatenate %102, %107, %112, %117, %122, %127, %132, %137 in 0 : vector<8x16xf32>, vector<8x16xf32>, vector<8x16xf32>, vector<8x16xf32>, vector<8x16xf32>, vector<8x16xf32>, vector<8x16xf32>, vector<8x16xf32> -> vector<64x16xf32>
    %cst_35 = arith.constant 0.000000e+00 : f32
    %139 = vector.broadcast %cst_35 : f32 to vector<64x16xf32>
    %140 = arith.cmpf ogt, %138, %139 : vector<64x16xf32>
    %cst_36 = arith.constant 2.000000e-01 : f32
    %141 = vector.broadcast %cst_36 : f32 to vector<64x16xf32>
    %142 = arith.mulf %141, %138 : vector<64x16xf32>
    %143 = arith.select %140, %138, %142 : vector<64x16xi1>, vector<64x16xf32>
    %c0_37 = arith.constant 0 : index
    %c0_38 = arith.constant 0 : index
    %144 = vector.load %arg11[%c0_37, %c0_38] : memref<8x16xf32, #tpu.memory_space<vmem>>, vector<8x16xf32>
    %145 = tpu.concatenate %144, %144, %144, %144, %144, %144, %144, %144 in 0 : vector<8x16xf32>, vector<8x16xf32>, vector<8x16xf32>, vector<8x16xf32>, vector<8x16xf32>, vector<8x16xf32>, vector<8x16xf32>, vector<8x16xf32> -> vector<64x16xf32>
    %cst_39 = arith.constant 0.000000e+00 : f32
    %146 = vector.broadcast %cst_39 : f32 to vector<64x16xf32>
    %147 = arith.cmpf ogt, %145, %146 : vector<64x16xf32>
    %cst_40 = arith.constant -1.000000e+30 : f32
    %148 = vector.broadcast %cst_40 : f32 to vector<64x16xf32>
    %149 = arith.select %147, %143, %148 : vector<64x16xi1>, vector<64x16xf32>
    %cst_41 = arith.constant dense<0xFF800000> : vector<64xf32>
    %150 = vector.multi_reduction <maximumf>, %149, %cst_41 [1] : vector<64x16xf32> to vector<64xf32>
    %151 = vector.shape_cast %150 : vector<64xf32> to vector<64x1xf32>
    %152 = vector.broadcast %151 : vector<64x1xf32> to vector<64x16xf32>
    %153 = arith.subf %149, %152 : vector<64x16xf32>
    %154 = math.exp %153 : vector<64x16xf32>
    %155 = arith.mulf %154, %145 : vector<64x16xf32>
    %cst_42 = arith.constant dense<0.000000e+00> : vector<64xf32>
    %156 = vector.multi_reduction <add>, %155, %cst_42 [1] : vector<64x16xf32> to vector<64xf32>
    %157 = vector.shape_cast %156 : vector<64xf32> to vector<64x1xf32>
    %cst_43 = arith.constant 1.000000e-30 : f32
    %158 = vector.broadcast %cst_43 : f32 to vector<64x1xf32>
    %159 = arith.maximumf %157, %158 : vector<64x1xf32>
    %160 = vector.broadcast %159 : vector<64x1xf32> to vector<64x16xf32>
    %161 = arith.divf %155, %160 : vector<64x16xf32>
    %cst_44 = arith.constant dense<0.000000e+00> : vector<64x32xf32>
    %162 = tpu.matmul %161, %11, %cst_44 {dimension_numbers = #tpu.dot_dimension_numbers<[1], [0], [0], [1], [0, 0, 1, 1], [], []>} : vector<64x16xf32>, vector<16x32xf32>, vector<64x32xf32> -> vector<64x32xf32>
    %163 = vector.extract_strided_slice %162 {offsets = [0, 0], sizes = [8, 4], strides = [1, 1]} : vector<64x32xf32> to vector<8x4xf32>
    %164 = vector.extract_strided_slice %162 {offsets = [8, 4], sizes = [8, 4], strides = [1, 1]} : vector<64x32xf32> to vector<8x4xf32>
    %165 = vector.extract_strided_slice %162 {offsets = [16, 8], sizes = [8, 4], strides = [1, 1]} : vector<64x32xf32> to vector<8x4xf32>
    %166 = vector.extract_strided_slice %162 {offsets = [24, 12], sizes = [8, 4], strides = [1, 1]} : vector<64x32xf32> to vector<8x4xf32>
    %167 = vector.extract_strided_slice %162 {offsets = [32, 16], sizes = [8, 4], strides = [1, 1]} : vector<64x32xf32> to vector<8x4xf32>
    %168 = vector.extract_strided_slice %162 {offsets = [40, 20], sizes = [8, 4], strides = [1, 1]} : vector<64x32xf32> to vector<8x4xf32>
    %169 = vector.extract_strided_slice %162 {offsets = [48, 24], sizes = [8, 4], strides = [1, 1]} : vector<64x32xf32> to vector<8x4xf32>
    %170 = vector.extract_strided_slice %162 {offsets = [56, 28], sizes = [8, 4], strides = [1, 1]} : vector<64x32xf32> to vector<8x4xf32>
    %171 = tpu.concatenate %163, %164, %165, %166, %167, %168, %169, %170 in 1 : vector<8x4xf32>, vector<8x4xf32>, vector<8x4xf32>, vector<8x4xf32>, vector<8x4xf32>, vector<8x4xf32>, vector<8x4xf32>, vector<8x4xf32> -> vector<8x32xf32>
    %cst_45 = arith.constant 0.000000e+00 : f32
    %172 = vector.broadcast %cst_45 : f32 to vector<8x32xf32>
    %173 = arith.maximumf %171, %172 : vector<8x32xf32>
    %c0_46 = arith.constant 0 : index
    %c0_47 = arith.constant 0 : index
    %174 = vector.load %arg12[%c0_46, %c0_47] : memref<32x8xf32, #tpu.memory_space<vmem>>, vector<32x8xf32>
    %cst_48 = arith.constant dense<0.000000e+00> : vector<8x8xf32>
    %175 = tpu.matmul %5, %174, %cst_48 {dimension_numbers = #tpu.dot_dimension_numbers<[1], [0], [0], [1], [0, 0, 1, 1], [], []>} : vector<8x32xf32>, vector<32x8xf32>, vector<8x8xf32> -> vector<8x8xf32>
    %c0_49 = arith.constant 0 : index
    %c0_50 = arith.constant 0 : index
    %176 = vector.load %arg13[%c0_49, %c0_50] : memref<32x8xf32, #tpu.memory_space<vmem>>, vector<32x8xf32>
    %cst_51 = arith.constant dense<0.000000e+00> : vector<8x8xf32>
    %177 = tpu.matmul %5, %176, %cst_51 {dimension_numbers = #tpu.dot_dimension_numbers<[1], [0], [0], [1], [0, 0, 1, 1], [], []>} : vector<8x32xf32>, vector<32x8xf32>, vector<8x8xf32> -> vector<8x8xf32>
    %178 = tpu.transpose %175, [1, 0] : vector<8x8xf32> -> vector<8x8xf32>
    %179 = vector.extract_strided_slice %177 {offsets = [0, 0], sizes = [8, 1], strides = [1, 1]} : vector<8x8xf32> to vector<8x1xf32>
    %180 = vector.extract_strided_slice %178 {offsets = [0, 0], sizes = [1, 8], strides = [1, 1]} : vector<8x8xf32> to vector<1x8xf32>
    %181 = vector.broadcast %179 : vector<8x1xf32> to vector<8x8xf32>
    %182 = vector.broadcast %180 : vector<1x8xf32> to vector<8x8xf32>
    %183 = arith.addf %181, %182 : vector<8x8xf32>
    %184 = vector.extract_strided_slice %177 {offsets = [0, 1], sizes = [8, 1], strides = [1, 1]} : vector<8x8xf32> to vector<8x1xf32>
    %185 = vector.extract_strided_slice %178 {offsets = [1, 0], sizes = [1, 8], strides = [1, 1]} : vector<8x8xf32> to vector<1x8xf32>
    %186 = vector.broadcast %184 : vector<8x1xf32> to vector<8x8xf32>
    %187 = vector.broadcast %185 : vector<1x8xf32> to vector<8x8xf32>
    %188 = arith.addf %186, %187 : vector<8x8xf32>
    %189 = vector.extract_strided_slice %177 {offsets = [0, 2], sizes = [8, 1], strides = [1, 1]} : vector<8x8xf32> to vector<8x1xf32>
    %190 = vector.extract_strided_slice %178 {offsets = [2, 0], sizes = [1, 8], strides = [1, 1]} : vector<8x8xf32> to vector<1x8xf32>
    %191 = vector.broadcast %189 : vector<8x1xf32> to vector<8x8xf32>
    %192 = vector.broadcast %190 : vector<1x8xf32> to vector<8x8xf32>
    %193 = arith.addf %191, %192 : vector<8x8xf32>
    %194 = vector.extract_strided_slice %177 {offsets = [0, 3], sizes = [8, 1], strides = [1, 1]} : vector<8x8xf32> to vector<8x1xf32>
    %195 = vector.extract_strided_slice %178 {offsets = [3, 0], sizes = [1, 8], strides = [1, 1]} : vector<8x8xf32> to vector<1x8xf32>
    %196 = vector.broadcast %194 : vector<8x1xf32> to vector<8x8xf32>
    %197 = vector.broadcast %195 : vector<1x8xf32> to vector<8x8xf32>
    %198 = arith.addf %196, %197 : vector<8x8xf32>
    %199 = vector.extract_strided_slice %177 {offsets = [0, 4], sizes = [8, 1], strides = [1, 1]} : vector<8x8xf32> to vector<8x1xf32>
    %200 = vector.extract_strided_slice %178 {offsets = [4, 0], sizes = [1, 8], strides = [1, 1]} : vector<8x8xf32> to vector<1x8xf32>
    %201 = vector.broadcast %199 : vector<8x1xf32> to vector<8x8xf32>
    %202 = vector.broadcast %200 : vector<1x8xf32> to vector<8x8xf32>
    %203 = arith.addf %201, %202 : vector<8x8xf32>
    %204 = vector.extract_strided_slice %177 {offsets = [0, 5], sizes = [8, 1], strides = [1, 1]} : vector<8x8xf32> to vector<8x1xf32>
    %205 = vector.extract_strided_slice %178 {offsets = [5, 0], sizes = [1, 8], strides = [1, 1]} : vector<8x8xf32> to vector<1x8xf32>
    %206 = vector.broadcast %204 : vector<8x1xf32> to vector<8x8xf32>
    %207 = vector.broadcast %205 : vector<1x8xf32> to vector<8x8xf32>
    %208 = arith.addf %206, %207 : vector<8x8xf32>
    %209 = vector.extract_strided_slice %177 {offsets = [0, 6], sizes = [8, 1], strides = [1, 1]} : vector<8x8xf32> to vector<8x1xf32>
    %210 = vector.extract_strided_slice %178 {offsets = [6, 0], sizes = [1, 8], strides = [1, 1]} : vector<8x8xf32> to vector<1x8xf32>
    %211 = vector.broadcast %209 : vector<8x1xf32> to vector<8x8xf32>
    %212 = vector.broadcast %210 : vector<1x8xf32> to vector<8x8xf32>
    %213 = arith.addf %211, %212 : vector<8x8xf32>
    %214 = vector.extract_strided_slice %177 {offsets = [0, 7], sizes = [8, 1], strides = [1, 1]} : vector<8x8xf32> to vector<8x1xf32>
    %215 = vector.extract_strided_slice %178 {offsets = [7, 0], sizes = [1, 8], strides = [1, 1]} : vector<8x8xf32> to vector<1x8xf32>
    %216 = vector.broadcast %214 : vector<8x1xf32> to vector<8x8xf32>
    %217 = vector.broadcast %215 : vector<1x8xf32> to vector<8x8xf32>
    %218 = arith.addf %216, %217 : vector<8x8xf32>
    %219 = tpu.concatenate %183, %188, %193, %198, %203, %208, %213, %218 in 0 : vector<8x8xf32>, vector<8x8xf32>, vector<8x8xf32>, vector<8x8xf32>, vector<8x8xf32>, vector<8x8xf32>, vector<8x8xf32>, vector<8x8xf32> -> vector<64x8xf32>
    %cst_52 = arith.constant 0.000000e+00 : f32
    %220 = vector.broadcast %cst_52 : f32 to vector<64x8xf32>
    %221 = arith.cmpf ogt, %219, %220 : vector<64x8xf32>
    %cst_53 = arith.constant 2.000000e-01 : f32
    %222 = vector.broadcast %cst_53 : f32 to vector<64x8xf32>
    %223 = arith.mulf %222, %219 : vector<64x8xf32>
    %224 = arith.select %221, %219, %223 : vector<64x8xi1>, vector<64x8xf32>
    %c0_54 = arith.constant 0 : index
    %c0_55 = arith.constant 0 : index
    %225 = vector.load %arg14[%c0_54, %c0_55] : memref<8x8xf32, #tpu.memory_space<vmem>>, vector<8x8xf32>
    %226 = tpu.concatenate %225, %225, %225, %225, %225, %225, %225, %225 in 0 : vector<8x8xf32>, vector<8x8xf32>, vector<8x8xf32>, vector<8x8xf32>, vector<8x8xf32>, vector<8x8xf32>, vector<8x8xf32>, vector<8x8xf32> -> vector<64x8xf32>
    %cst_56 = arith.constant 0.000000e+00 : f32
    %227 = vector.broadcast %cst_56 : f32 to vector<64x8xf32>
    %228 = arith.cmpf ogt, %226, %227 : vector<64x8xf32>
    %cst_57 = arith.constant -1.000000e+30 : f32
    %229 = vector.broadcast %cst_57 : f32 to vector<64x8xf32>
    %230 = arith.select %228, %224, %229 : vector<64x8xi1>, vector<64x8xf32>
    %cst_58 = arith.constant dense<0xFF800000> : vector<64xf32>
    %231 = vector.multi_reduction <maximumf>, %230, %cst_58 [1] : vector<64x8xf32> to vector<64xf32>
    %232 = vector.shape_cast %231 : vector<64xf32> to vector<64x1xf32>
    %233 = vector.broadcast %232 : vector<64x1xf32> to vector<64x8xf32>
    %234 = arith.subf %230, %233 : vector<64x8xf32>
    %235 = math.exp %234 : vector<64x8xf32>
    %236 = arith.mulf %235, %226 : vector<64x8xf32>
    %cst_59 = arith.constant dense<0.000000e+00> : vector<64xf32>
    %237 = vector.multi_reduction <add>, %236, %cst_59 [1] : vector<64x8xf32> to vector<64xf32>
    %238 = vector.shape_cast %237 : vector<64xf32> to vector<64x1xf32>
    %cst_60 = arith.constant 1.000000e-30 : f32
    %239 = vector.broadcast %cst_60 : f32 to vector<64x1xf32>
    %240 = arith.maximumf %238, %239 : vector<64x1xf32>
    %241 = vector.broadcast %240 : vector<64x1xf32> to vector<64x8xf32>
    %242 = arith.divf %236, %241 : vector<64x8xf32>
    %cst_61 = arith.constant dense<0.000000e+00> : vector<64x32xf32>
    %243 = tpu.matmul %242, %5, %cst_61 {dimension_numbers = #tpu.dot_dimension_numbers<[1], [0], [0], [1], [0, 0, 1, 1], [], []>} : vector<64x8xf32>, vector<8x32xf32>, vector<64x32xf32> -> vector<64x32xf32>
    %244 = vector.extract_strided_slice %243 {offsets = [0, 0], sizes = [8, 4], strides = [1, 1]} : vector<64x32xf32> to vector<8x4xf32>
    %245 = vector.extract_strided_slice %243 {offsets = [8, 4], sizes = [8, 4], strides = [1, 1]} : vector<64x32xf32> to vector<8x4xf32>
    %246 = vector.extract_strided_slice %243 {offsets = [16, 8], sizes = [8, 4], strides = [1, 1]} : vector<64x32xf32> to vector<8x4xf32>
    %247 = vector.extract_strided_slice %243 {offsets = [24, 12], sizes = [8, 4], strides = [1, 1]} : vector<64x32xf32> to vector<8x4xf32>
    %248 = vector.extract_strided_slice %243 {offsets = [32, 16], sizes = [8, 4], strides = [1, 1]} : vector<64x32xf32> to vector<8x4xf32>
    %249 = vector.extract_strided_slice %243 {offsets = [40, 20], sizes = [8, 4], strides = [1, 1]} : vector<64x32xf32> to vector<8x4xf32>
    %250 = vector.extract_strided_slice %243 {offsets = [48, 24], sizes = [8, 4], strides = [1, 1]} : vector<64x32xf32> to vector<8x4xf32>
    %251 = vector.extract_strided_slice %243 {offsets = [56, 28], sizes = [8, 4], strides = [1, 1]} : vector<64x32xf32> to vector<8x4xf32>
    %252 = tpu.concatenate %244, %245, %246, %247, %248, %249, %250, %251 in 1 : vector<8x4xf32>, vector<8x4xf32>, vector<8x4xf32>, vector<8x4xf32>, vector<8x4xf32>, vector<8x4xf32>, vector<8x4xf32>, vector<8x4xf32> -> vector<8x32xf32>
    %cst_62 = arith.constant 0.000000e+00 : f32
    %253 = vector.broadcast %cst_62 : f32 to vector<8x32xf32>
    %254 = arith.maximumf %252, %253 : vector<8x32xf32>
    %255 = tpu.concatenate %173, %254 in 0 : vector<8x32xf32>, vector<8x32xf32> -> vector<16x32xf32>
    %c0_63 = arith.constant 0 : index
    %c0_64 = arith.constant 0 : index
    %256 = vector.load %arg15[%c0_63, %c0_64] : memref<32x32xf32, #tpu.memory_space<vmem>>, vector<32x32xf32>
    %cst_65 = arith.constant dense<0.000000e+00> : vector<16x32xf32>
    %257 = tpu.matmul %255, %256, %cst_65 {dimension_numbers = #tpu.dot_dimension_numbers<[1], [0], [0], [1], [0, 0, 1, 1], [], []>} : vector<16x32xf32>, vector<32x32xf32>, vector<16x32xf32> -> vector<16x32xf32>
    %c0_66 = arith.constant 0 : index
    %c0_67 = arith.constant 0 : index
    %258 = vector.load %arg16[%c0_66, %c0_67] : memref<1x32xf32, #tpu.memory_space<vmem>>, vector<1x32xf32>
    %259 = vector.broadcast %258 : vector<1x32xf32> to vector<16x32xf32>
    %260 = arith.addf %257, %259 : vector<16x32xf32>
    %261 = math.tanh %260 : vector<16x32xf32>
    %262 = vector.extract_strided_slice %261 {offsets = [0, 0], sizes = [8, 32], strides = [1, 1]} : vector<16x32xf32> to vector<8x32xf32>
    %cst_68 = arith.constant dense<0.000000e+00> : vector<32xf32>
    %263 = vector.multi_reduction <add>, %262, %cst_68 [0] : vector<8x32xf32> to vector<32xf32>
    %264 = vector.shape_cast %263 : vector<32xf32> to vector<1x32xf32>
    %cst_69 = arith.constant 8.000000e+00 : f32
    %265 = vector.broadcast %cst_69 : f32 to vector<1x32xf32>
    %266 = arith.divf %264, %265 : vector<1x32xf32>
    %c0_70 = arith.constant 0 : index
    %c0_71 = arith.constant 0 : index
    %267 = vector.load %arg17[%c0_70, %c0_71] : memref<1x32xf32, #tpu.memory_space<vmem>>, vector<1x32xf32>
    %268 = arith.mulf %266, %267 : vector<1x32xf32>
    %cst_72 = arith.constant dense<0.000000e+00> : vector<1xf32>
    %269 = vector.multi_reduction <add>, %268, %cst_72 [1] : vector<1x32xf32> to vector<1xf32>
    %270 = vector.shape_cast %269 : vector<1xf32> to vector<1x1xf32>
    %271 = vector.extract_strided_slice %261 {offsets = [8, 0], sizes = [8, 32], strides = [1, 1]} : vector<16x32xf32> to vector<8x32xf32>
    %cst_73 = arith.constant dense<0.000000e+00> : vector<32xf32>
    %272 = vector.multi_reduction <add>, %271, %cst_73 [0] : vector<8x32xf32> to vector<32xf32>
    %273 = vector.shape_cast %272 : vector<32xf32> to vector<1x32xf32>
    %cst_74 = arith.constant 8.000000e+00 : f32
    %274 = vector.broadcast %cst_74 : f32 to vector<1x32xf32>
    %275 = arith.divf %273, %274 : vector<1x32xf32>
    %c0_75 = arith.constant 0 : index
    %c0_76 = arith.constant 0 : index
    %276 = vector.load %arg17[%c0_75, %c0_76] : memref<1x32xf32, #tpu.memory_space<vmem>>, vector<1x32xf32>
    %277 = arith.mulf %275, %276 : vector<1x32xf32>
    %cst_77 = arith.constant dense<0.000000e+00> : vector<1xf32>
    %278 = vector.multi_reduction <add>, %277, %cst_77 [1] : vector<1x32xf32> to vector<1xf32>
    %279 = vector.shape_cast %278 : vector<1xf32> to vector<1x1xf32>
    %280 = arith.maximumf %270, %279 : vector<1x1xf32>
    %281 = arith.subf %270, %280 : vector<1x1xf32>
    %282 = math.exp %281 : vector<1x1xf32>
    %283 = arith.subf %279, %280 : vector<1x1xf32>
    %284 = math.exp %283 : vector<1x1xf32>
    %285 = arith.addf %282, %284 : vector<1x1xf32>
    %286 = arith.divf %282, %285 : vector<1x1xf32>
    %287 = vector.broadcast %286 : vector<1x1xf32> to vector<8x32xf32>
    %288 = arith.mulf %287, %173 : vector<8x32xf32>
    %289 = arith.divf %284, %285 : vector<1x1xf32>
    %290 = vector.broadcast %289 : vector<1x1xf32> to vector<8x32xf32>
    %291 = arith.mulf %290, %254 : vector<8x32xf32>
    %292 = arith.addf %288, %291 : vector<8x32xf32>
    %c0_78 = arith.constant 0 : index
    %c0_79 = arith.constant 0 : index
    %293 = vector.load %arg18[%c0_78, %c0_79] : memref<8x32xf32, #tpu.memory_space<vmem>>, vector<8x32xf32>
    tpu.vector_store %arg18[%c0_78, %c0_79], %292 {strides = array<i32>} : memref<8x32xf32, #tpu.memory_space<vmem>>, vector<8x32xf32>,
    %c0_80 = arith.constant 0 : index
    %c0_81 = arith.constant 0 : index
    %294 = vector.load %arg15[%c0_80, %c0_81] : memref<32x32xf32, #tpu.memory_space<vmem>>, vector<32x32xf32>
    %cst_82 = arith.constant dense<0.000000e+00> : vector<16x32xf32>
    %295 = tpu.matmul %92, %294, %cst_82 {dimension_numbers = #tpu.dot_dimension_numbers<[1], [0], [0], [1], [0, 0, 1, 1], [], []>} : vector<16x32xf32>, vector<32x32xf32>, vector<16x32xf32> -> vector<16x32xf32>
    %c0_83 = arith.constant 0 : index
    %c0_84 = arith.constant 0 : index
    %296 = vector.load %arg16[%c0_83, %c0_84] : memref<1x32xf32, #tpu.memory_space<vmem>>, vector<1x32xf32>
    %297 = vector.broadcast %296 : vector<1x32xf32> to vector<16x32xf32>
    %298 = arith.addf %295, %297 : vector<16x32xf32>
    %299 = math.tanh %298 : vector<16x32xf32>
    %cst_85 = arith.constant dense<0.000000e+00> : vector<32xf32>
    %300 = vector.multi_reduction <add>, %299, %cst_85 [0] : vector<16x32xf32> to vector<32xf32>
    %301 = vector.shape_cast %300 : vector<32xf32> to vector<1x32xf32>
    %cst_86 = arith.constant 1.600000e+01 : f32
    %302 = vector.broadcast %cst_86 : f32 to vector<1x32xf32>
    %303 = arith.divf %301, %302 : vector<1x32xf32>
    %c0_87 = arith.constant 0 : index
    %c0_88 = arith.constant 0 : index
    %304 = vector.load %arg17[%c0_87, %c0_88] : memref<1x32xf32, #tpu.memory_space<vmem>>, vector<1x32xf32>
    %305 = arith.mulf %303, %304 : vector<1x32xf32>
    %cst_89 = arith.constant dense<0.000000e+00> : vector<1xf32>
    %306 = vector.multi_reduction <add>, %305, %cst_89 [1] : vector<1x32xf32> to vector<1xf32>
    %307 = vector.shape_cast %306 : vector<1xf32> to vector<1x1xf32>
    %308 = arith.subf %307, %307 : vector<1x1xf32>
    %309 = math.exp %308 : vector<1x1xf32>
    %310 = arith.divf %309, %309 : vector<1x1xf32>
    %311 = vector.broadcast %310 : vector<1x1xf32> to vector<16x32xf32>
    %312 = arith.mulf %311, %92 : vector<16x32xf32>
    %c0_90 = arith.constant 0 : index
    %c0_91 = arith.constant 0 : index
    %313 = vector.load %arg19[%c0_90, %c0_91] : memref<16x32xf32, #tpu.memory_space<vmem>>, vector<16x32xf32>
    tpu.vector_store %arg19[%c0_90, %c0_91], %312 {strides = array<i32>} : memref<16x32xf32, #tpu.memory_space<vmem>>, vector<16x32xf32>,
    return
  }
}

</mosaic_0001>

<bundles_post_ra>
// kernel: tpu_custom_call.1
= control target key start
LH: loop header
LB: loop body
LE: loop exit
PB: predicated region body
PF: predicated region fallthrough
CT: control target
= control target key end

     0   :  { %s3940_s0 = inlined_call_operand.vmem [shape: f32[8,16], index: 0, kind: input, shape index: {}]   ;;  %s3941_s1 = inlined_call_operand.vmem [shape: f32[16,32], index: 1, kind: input, shape index: {}]   ;;  %s3942_s2 = inlined_call_operand.vmem [shape: f32[1,32], index: 2, kind: input, shape index: {}]   ;;  %s3943_s3 = inlined_call_operand.vmem [shape: f32[16,16], index: 3, kind: input, shape index: {}]   ;;  %s3944_s4 = inlined_call_operand.vmem [shape: f32[16,32], index: 4, kind: input, shape index: {}]   ;;  %s3945_s5 = inlined_call_operand.vmem [shape: f32[1,32], index: 5, kind: input, shape index: {}]   ;;  %s3946_s6 = inlined_call_operand.vmem [shape: f32[32,8], index: 6, kind: input, shape index: {}]   ;;  %s3947_s7 = inlined_call_operand.vmem [shape: f32[32,8], index: 7, kind: input, shape index: {}]   ;;  %s3948_s8 = inlined_call_operand.vmem [shape: f32[16,8], index: 8, kind: input, shape index: {}]   ;;  %s3949_s9 = inlined_call_operand.vmem [shape: f32[32,8], index: 9, kind: input, shape index: {}]   ;;  %s3950_s10 = inlined_call_operand.vmem [shape: f32[32,8], index: 10, kind: input, shape index: {}]   ;;  %s3951_s11 = inlined_call_operand.vmem [shape: f32[8,16], index: 11, kind: input, shape index: {}]   ;;  %s3952_s12 = inlined_call_operand.vmem [shape: f32[32,8], index: 12, kind: input, shape index: {}]   ;;  %s3953_s13 = inlined_call_operand.vmem [shape: f32[32,8], index: 13, kind: input, shape index: {}]   ;;  %s3954_s14 = inlined_call_operand.vmem [shape: f32[8,8], index: 14, kind: input, shape index: {}]   ;;  %s3955_s15 = inlined_call_operand.vmem [shape: f32[32,32], index: 15, kind: input, shape index: {}]   ;;  %s3956_s16 = inlined_call_operand.vmem [shape: f32[1,32], index: 16, kind: input, shape index: {}]   ;;  %s3957_s17 = inlined_call_operand.vmem [shape: f32[1,32], index: 17, kind: input, shape index: {}]   ;;  %s3958_s18 = inlined_call_operand.hbm [shape: f32[8,32], index: 18, kind: output, shape index: {0}]   ;;  %s3959_s19 = inlined_call_operand.hbm [shape: f32[16,32], index: 19, kind: output, shape index: {1}]  }
   0x1   :  { %3962 = sst [smem:[#allocation8_spill]] %s3940_s0 }
   0x2   :  { %3963 = sst [smem:[#allocation9_spill]] %s3941_s1 }
   0x3   :  { %3964 = sst [smem:[#allocation10_spill]] %s3942_s2 }
   0x4   :  { %3965 = sst [smem:[#allocation11_spill]] %s3943_s3 }
   0x5   :  { %25 = vsyncpa [#allocation3], 0  ;;  %s3966_s20 = sld [smem:[#allocation9_spill]]  ;;  %v149_v2 = vld [vmem:[%s3944_s4] sm:$0xff]  ;;  %v2998_v3 = vmov 0.0|0.0   ;;  %v150_v5 = vld [vmem:[%s3944_s4 + $0x8] sm:$0xff] }
   0x6   :  { %2693 = vmatprep.subr.bf16.mxu0 %v2998_v3  ;;  %vm2999_vm0 = vmmov 0   ;;  %v3000_v6 = vmov 0.0   ;;  %vm73_vm1 = vcmask 130048   ;;  %s3967_s26 = sld [smem:[#allocation11_spill]]  ;;  %v2696_v8 = vpack.c.bf16 %v150_v5, %v149_v2  ;;  %v239_v9 = vld [vmem:[%s3946_s6] sm:$0xff]  ;;  %v240_v10 = vld [vmem:[%s3946_s6 + $0x8] sm:$0xff] }
   0x7   :  { %2539 = vmatprep.mubr.msk.f32.mxu0 %vm2999_vm0, %v3000_v6  ;;  %v2701_v12 = vpack.c.bf16 %v240_v10, %v239_v9  ;;  %v317_v13 = vld [vmem:[%s3947_s7] sm:$0xff]  ;;  %v318_v14 = vld [vmem:[%s3947_s7 + $0x8] sm:$0xff] }
   0x8   :  { %2697 = vmatprep.subr.bf16.mxu1 %v2696_v8  ;;  %v2706_v15 = vpack.c.bf16 %v318_v14, %v317_v13 }
   0xb   :  { %v64_v0 = vld [vmem:[%s3966_s20] sm:$0xff]  ;;  %v65_v1 = vld [vmem:[%s3966_s20 + $0x8] sm:$0xff]  ;;  %s3968_s20 = sld [smem:[#allocation8_spill]] }
   0xc   :  { %v2694_v4 = vpack.c.bf16 %v65_v1, %v64_v0  ;;  %v147_v7 = vld [vmem:[%s3967_s26] sm:$0xff] }
   0xd   :  { %2546 = vmatprep.mubr.msk.f32.mxu1 %vm73_vm1, %v147_v7 }
   0xe   :  { %2695 = vmatpush3.bf16.msra.mxu0 %v2694_v4 }
   0xf   :  { %2700 = vmatprep.subr.bf16.mxu0 %v2998_v3 }
  0x11   :  { %v63_v11 = vld [vmem:[%s3968_s20] sm:$0xff] }
  0x12   :  { %26 = vsyncpa [#allocation5], 0  ;;  %2699 = vmatpush3.bf16.msra.mxu1 %v2696_v8  ;;  %v148_v16 = vld [vmem:[%s3967_s26 + $0x8] sm:$0xff]  ;;  %2540 = vmatmul.mubr.msk.f32.vlgmr.msra.gmra.mrb[0].mxu0 %vm73_vm1, %v63_v11  ;;  %v241_v17 = vld [vmem:[%s3946_s6 + $0x10] sm:$0xff]  ;;  %s3969_s2 = sld [smem:[#allocation10_spill]]  ;;  %vm243_vm2 = vcmask 261120   ;;  %v444_v9 = vlaneseq }
  0x13   :  { %2707 = vmatprep.subr.bf16.mxu1 %v2706_v15  ;;  %2702 = vmatpush3.bf16.msra.mxu0 %v2701_v12  ;;  %v242_v18 = vld [vmem:[%s3946_s6 + $0x18] sm:$0xff]  ;;  %v319_v20 = vld [vmem:[%s3947_s7 + $0x10] sm:$0xff]  ;;  %v1039_v23 = vld [vmem:[%s3949_s9] sm:$0xff]  ;;  %v3001_v45 = vmov 0   ;;  %v3002_v50 = vmov 1   ;;  %v3003_v53 = vmov 3  }
  0x14   :  { %2557 = vmatprep.mubr.msk.f32.mxu0 %vm2999_vm0, %v3000_v6  ;;  %2703 = vmatprep.subr.bf16.mxu0 %v2998_v3  ;;  %v2704_v19 = vpack.c.bf16 %v242_v18, %v241_v17  ;;  %v320_v21 = vld [vmem:[%s3947_s7 + $0x18] sm:$0xff]  ;;  %v1040_v24 = vld [vmem:[%s3949_s9 + $0x8] sm:$0xff]  ;;  %v2399_v28 = vld [vmem:[%s3945_s5] ss:$0 sm:$0xff]  ;;  %v3004_v56 = vmov 2   ;;  %v3005_v57 = vmov 4  }
  0x15   :  { %2547 = vmatmul.mubr.msk.f32.vlgmr.msra.gmra.mrb[0].mxu1 %vm73_vm1, %v148_v16  ;;  %v2710_v22 = vpack.c.bf16 %v320_v21, %v319_v20  ;;  %v2714_v25 = vpack.c.bf16 %v1040_v24, %v1039_v23  ;;  %v1041_v32 = vld [vmem:[%s3949_s9 + $0x10] sm:$0xff]  ;;  %v1042_v33 = vld [vmem:[%s3949_s9 + $0x18] sm:$0xff]  ;;  %v1118_v39 = vld [vmem:[%s3950_s10] sm:$0xff]  ;;  %2775 = vset.pattern.permute.xlu0 %v3001_v45  ;;  %v3006_v58 = vmov 6   ;;  %v3007_v59 = vmov 7   ;;  %s3010_s24 = smov [#allocation4]  }
  0x16   :  { %2709 = vmatpush3.bf16.msra.mxu1 %v2706_v15  ;;  %v2718_v37 = vpack.c.bf16 %v1042_v33, %v1041_v32  ;;  %v1119_v40 = vld [vmem:[%s3950_s10 + $0x8] sm:$0xff]  ;;  %v1120_v42 = vld [vmem:[%s3950_s10 + $0x10] sm:$0xff]  ;;  %v1121_v43 = vld [vmem:[%s3950_s10 + $0x18] sm:$0xff]  ;;  %v3008_v60 = vmov 5   ;;  %v3244_v11 = vshrl.u32 %v444_v9, 7  ;;  %vm616_vm5 = vcmask 64512  }
  0x17   :  { %2705 = vmatpush3.bf16.msra.mxu0 %v2704_v19  ;;  %2711 = vmatprep.subr.bf16.mxu1 %v2710_v22  ;;  %v2723_v41 = vpack.c.bf16 %v1119_v40, %v1118_v39  ;;  %v2726_v44 = vpack.c.bf16 %v1121_v43, %v1120_v42  ;;  %s2382_s25 = sshll.u32 %s3010_s24, 4  ;;  %s3903_s25 = int_to_ptr.vmem [resolvable:$true] %s2382_s25 }
  0x18   :  { %v2397_v26 = vld [vmem:[%s3969_s2] ss:$0 sm:$0xff]  ;;  %v3251_v14 = vsub.s32 0, %v3244_v11  ;;  %v3260_v18 = vsub.s32 2, %v3244_v11  ;;  %v3265_v21 = vsub.s32 1, %v3244_v11 }
  0x1a   :  { %2713 = vmatpush3.bf16.msra.mxu1 %v2710_v22  ;;  %v3268_v22 = vsub.s32 3, %v3244_v11 }
  0x1b   :  { %2715 = vmatprep.subr.bf16.mxu1 %v2714_v25 }
  0xe5   :  { %v143_v27 = vpop.f32.mrb[0].mxu0 }
  0xe6   :  { %v3180_v29 = vadd.f32 %v2397_v26, %v143_v27  ;;  %v2541_v30 = vpop.f32.mrb[1].mxu0  ;;  %v3282_v26 = vld [vmem:[%s3948_s8 + $0x8] sm:$0xff] }
  0xe7   :  { %vm599_vm6 = vcmp.gt.f32.partialorder %v3282_v26, 0.0 }
  0xe8   :  { %v2548_v31 = vpop.f32.mrb[0].mxu1  ;;  %2558 = vmatmul.mubr.msk.f32.vlgmr.msra.gmra.mrb[2].mxu0 %vm243_vm2, %v3180_v29  ;;  %2571 = vmatprep.subr.mxu0 %v3180_v29 }
  0xe9   :  { %v236_v34 = vadd.f32 %v2548_v31, %v2399_v28  ;;  %v230_v35 = vpop.f32.mrb[1].mxu1  ;;  %2572 = vmatpush3.msra.mxu0 %v3180_v29  ;;  %v3290_v31 = vld [vmem:[%s3951_s11] sm:$0xff] }
  0xea   :  { %v231_v36 = vadd.f32 %v2399_v28, %v230_v35  ;;  %2732 = vmatprep.subr.bf16.mxu0 %v2998_v3  ;;  %v3285_v28 = vsub.s32 4, %v3244_v11  ;;  %vm1322_vm8 = vcmp.gt.f32.partialorder %v3290_v31, 0.0 }
  0xec   :  { %2568 = vmatprep.mubr.msk.f32.mxu1 %vm243_vm2, %v231_v36  ;;  %v2728_v38 = vpack.c.bf16 %v236_v34, %v231_v36 }
  0xed   :  { %2569 = vmatmul.mubr.msk.f32.vlgmr.msra.gmra.mrb[2].mxu1 %vm243_vm2, %v236_v34 }
  0xee   :  { %2717 = vmatpush3.bf16.msra.mxu1 %v2714_v25  ;;  %2605 = vmatprep.mubr.msk.f32.mxu1 %vm243_vm2, %v231_v36  ;;  %v3277_v25 = vld [vmem:[%s3948_s8] sm:$0xff] }
  0xef   :  { %2719 = vmatprep.subr.bf16.mxu1 %v2718_v37  ;;  %vm598_vm4 = vcmp.gt.f32.partialorder %v3277_v25, 0.0 }
  0xf2   :  { %2721 = vmatpush3.bf16.msra.mxu1 %v2718_v37 }
  0xf3   :  { %2722 = vmatprep.subr.bf16.mxu1 %v2998_v3 }
  0xf5   :  { %2606 = vmatmul.mubr.msk.f32.vlgmr.msra.gmra.mrb[4].mxu1 %vm243_vm2, %v236_v34 }
  0xf6   :  { %2724 = vmatpush3.bf16.msra.mxu1 %v2723_v41  ;;  %2616 = vmatprep.mubr.msk.f32.mxu1 %vm2999_vm0, %v3000_v6 }
  0xf7   :  { %2725 = vmatprep.subr.bf16.mxu1 %v2998_v3 }
  0xfa   :  { %2727 = vmatpush3.bf16.msra.mxu1 %v2726_v44 }
  0xfb   :  { %2729 = vmatprep.subr.bf16.mxu1 %v2728_v38 }
  0xfd   :  { %2617 = vmatmul.mubr.msk.f32.vlgmr.msra.gmra.mrb[6].mxu1 %vm243_vm2, %v3180_v29 }
  0xfe   :  { %2731 = vmatpush3.bf16.msra.mxu1 %v2728_v38 }
  0xff   :  { %2738 = vmatprep.subr.bf16.mxu1 %v2998_v3 }
 0x1bb   :  { %v313_v46 = vpop.f32.mrb[2].mxu0 }
 0x1bc   :  { %402 = vxpose.xlu1.b32.start.end [1/1] (short) (narrow) %v313_v46, 8  ;;  %v2559_v47 = vpop.f32.mrb[3].mxu0 }
 0x1c0   :  { %v2570_v48 = vpop.f32.mrb[2].mxu1 }
 0x1c1   :  { %441 = vperm.xlu0 %2775, %v2570_v48   ;;  %v393_v49 = vpop.f32.mrb[3].mxu1 }
 0x1c5   :  { %2776 = vset.pattern.permute.xlu0 %v3002_v50 }
 0x1c6   :  { %455 = vperm.xlu0 %2776, %v2570_v48  }
 0x1c8   :  { %v2607_v51 = vpop.f32.mrb[4].mxu1 }
 0x1c9   :  { %v1109_v52 = vpop.f32.mrb[5].mxu1 }
 0x1ca   :  { %2782 = vset.pattern.permute.xlu0 %v3003_v53 }
 0x1cb   :  { %479 = vperm.xlu0 %2782, %v393_v49  }
 0x1d0   :  { %v1188_v54 = vpop.f32.mrb[6].mxu1 }
 0x1d1   :  { %v2618_v55 = vpop.f32.mrb[7].mxu1 }
 0x1da   :  { %2777 = vset.pattern.permute.xlu1 %v3004_v56 }
 0x1db   :  { %469 = vperm.xlu1 %2777, %v2570_v48  }
 0x1df   :  { %2778 = vset.pattern.permute.xlu1 %v3003_v53 }
 0x1e0   :  { %483 = vperm.xlu1 %2778, %v2570_v48  }
 0x1e4   :  { %2779 = vset.pattern.permute.xlu1 %v3001_v45 }
 0x1e5   :  { %436 = vperm.xlu1 %2779, %v393_v49  }
 0x1e9   :  { %1192 = vxpose.xlu0.b32.start [1/2] (short) (narrow) %v1109_v52, 8  ;;  %2780 = vset.pattern.permute.xlu1 %v3002_v50  ;;  %v3321_v52 = vsub.s32 5, %v3244_v11 }
 0x1ea   :  { %451 = vperm.xlu1 %2780, %v393_v49  }
 0x1ed   :  { %1193 = vxpose.xlu0.b32.end [2/2] (short) (narrow) %v2607_v51, 8  ;;  %v3318_v51 = vsub.s32 6, %v3244_v11 }
 0x1ee   :  { %2781 = vset.pattern.permute.xlu1 %v3004_v56 }
 0x1ef   :  { %465 = vperm.xlu1 %2781, %v393_v49  }
 0x1f3   :  { %1244 = vperm.xlu1 %2781, %v1188_v54  }
 0x1f7   :  { %2785 = vset.pattern.permute.xlu1 %v3003_v53 }
 0x1f8   :  { %1253 = vperm.xlu1 %2785, %v1188_v54  }
 0x1fc   :  { %2786 = vset.pattern.permute.xlu1 %v3005_v57 }
 0x1fd   :  { %1262 = vperm.xlu1 %2786, %v1188_v54  }
 0x201   :  { %2788 = vset.pattern.permute.xlu1 %v3006_v58 }
 0x202   :  { %1280 = vperm.xlu1 %2788, %v1188_v54  }
 0x206   :  { %2789 = vset.pattern.permute.xlu1 %v3007_v59 }
 0x207   :  { %1289 = vperm.xlu1 %2789, %v1188_v54  }
 0x20b   :  { %2790 = vset.pattern.permute.xlu1 %v3005_v57 }
 0x20c   :  { %493 = vperm.xlu1 %2790, %v393_v49  }
 0x210   :  { %497 = vperm.xlu1 %2790, %v2570_v48  }
 0x214   :  { %2791 = vset.pattern.permute.xlu1 %v3008_v60 }
 0x215   :  { %507 = vperm.xlu1 %2791, %v393_v49  }
 0x216   :  { %2783 = vset.pattern.permute.xlu0 %v3001_v45 }
 0x217   :  { %1226 = vperm.xlu0 %2783, %v1188_v54  }
 0x219   :  { %511 = vperm.xlu1 %2791, %v2570_v48  }
 0x21b   :  { %2784 = vset.pattern.permute.xlu0 %v3002_v50 }
 0x21c   :  { %1235 = vperm.xlu0 %2784, %v1188_v54  }
 0x21d   :  { %2792 = vset.pattern.permute.xlu1 %v3006_v58 }
 0x21e   :  { %521 = vperm.xlu1 %2792, %v393_v49  }
 0x220   :  { %2787 = vset.pattern.permute.xlu0 %v3008_v60 }
 0x221   :  { %1271 = vperm.xlu0 %2787, %v1188_v54  }
 0x222   :  { %525 = vperm.xlu1 %2792, %v2570_v48  }
 0x225   :  { %2793 = vset.pattern.permute.xlu0 %v3007_v59 }
 0x226   :  { %535 = vperm.xlu0 %2793, %v393_v49   ;;  %2794 = vset.pattern.permute.xlu1 %v3007_v59 }
 0x227   :  { %539 = vperm.xlu1 %2794, %v2570_v48  }
 0x22a   :  { %2796 = vset.pattern.permute.xlu0 %v3002_v50 }
 0x22b   :  { %2795 = vset.pattern.permute.xlu1 %v3001_v45 }
 0x23c   :  { %v3234_v61 = vpop.trf.xlu1 }
 0x23d   :  { %v447_v17 = vrot.slane %v3234_v61, %v3251_v14  ;;  %v3298_v36 = vrot.slane %v3234_v61, %v3265_v21  ;;  %v3315_v50 = vrot.slane %v3234_v61, %v3268_v22  ;;  %v3327_v55 = vrot.slane %v3234_v61, %v3260_v18 }
 0x240   :  { %v442_v7 = vpop.permute.xlu0 %441 }
 0x241   :  { %v449_v27 = vadd.f32 %v447_v17, %v442_v7 }
 0x243   :  { %v565_v38 = vmul.f32 0.2, %v449_v27  ;;  %vm549_vm9 = vcmp.gt.f32.partialorder %v449_v27, 0.0 }
 0x245   :  { %v3242_v10 = vpop.permute.xlu0 %455  ;;  %v581_v9 = vsel %vm549_vm9, %v449_v27, %v565_v38  ;;  %v3345_v27 = vsub.s32 7, %v3244_v11 }
 0x24a   :  { %v3248_v13 = vpop.permute.xlu0 %479 }
 0x25a   :  { %v3236_v62 = vpop.permute.xlu1 %469 }
 0x25f   :  { %v3238_v63 = vpop.permute.xlu1 %483 }
 0x264   :  { %v437_v0 = vpop.permute.xlu1 %436 }
 0x265   :  { %v448_v19 = vadd.f32 %v447_v17, %v437_v0 }
 0x267   :  { %v564_v32 = vmul.f32 0.2, %v448_v19  ;;  %vm548_vm3 = vcmp.gt.f32.partialorder %v448_v19, 0.0 }
 0x269   :  { %v452_v1 = vpop.permute.xlu1 %451  ;;  %v3255_v16 = vpop.trf.xlu0  ;;  %v580_v46 = vsel %vm548_vm3, %v448_v19, %v564_v32 }
 0x26a   :  { %v1250_v20 = vrot.slane %v3255_v16, %v3260_v18  ;;  %v1232_v24 = vrot.slane %v3255_v16, %v3251_v14  ;;  %v1259_v34 = vrot.slane %v3255_v16, %v3268_v22  ;;  %v1268_v39 = vrot.slane %v3255_v16, %v3285_v28 }
 0x26b   :  { %v1241_v40 = vrot.slane %v3255_v16, %v3265_v21  ;;  %v462_v47 = vadd.f32 %v3298_v36, %v452_v1  ;;  %v3331_v1 = vsel %vm598_vm4, %v580_v46, -1e+30  ;;  %v1277_v32 = vrot.slane %v3255_v16, %v3321_v52 }
 0x26c   :  { %v1286_v38 = vrot.slane %v3255_v16, %v3318_v51  ;;  %v1295_v46 = vrot.slane %v3255_v16, %v3345_v27 }
 0x26d   :  { %v566_v17 = vmul.f32 0.2, %v462_v47  ;;  %vm550_vm13 = vcmp.gt.f32.partialorder %v462_v47, 0.0 }
 0x26e   :  { %v3240_v2 = vpop.permute.xlu1 %465 }
 0x26f   :  { %v476_v19 = vadd.f32 %v3327_v55, %v3240_v2 }
 0x271   :  { %vm552_vm15 = vcmp.gt.f32.partialorder %v476_v19, 0.0 }
 0x272   :  { %v1245_v4 = vpop.permute.xlu1 %1244 }
 0x273   :  { %v1251_v33 = vadd.f32 %v1250_v20, %v1245_v4 }
 0x275   :  { %v1307_v41 = vmul.f32 0.2, %v1251_v33  ;;  %vm1299_vm10 = vcmp.gt.f32.partialorder %v1251_v33, 0.0 }
 0x277   :  { %v1254_v5 = vpop.permute.xlu1 %1253  ;;  %v1315_v7 = vsel %vm1299_vm10, %v1251_v33, %v1307_v41  ;;  %v568_v41 = vmul.f32 0.2, %v476_v19 }
 0x278   :  { %v1260_v42 = vadd.f32 %v1259_v34, %v1254_v5  ;;  %v617_v34 = vsel %vm616_vm5, %v3331_v1, -inf  ;;  %v3351_v33 = vsel %vm1322_vm8, %v1315_v7, -1e+30 }
 0x27a   :  { %v1308_v4 = vmul.f32 0.2, %v1260_v42  ;;  %vm1300_vm12 = vcmp.gt.f32.partialorder %v1260_v42, 0.0 }
 0x27c   :  { %v1263_v8 = vpop.permute.xlu1 %1262  ;;  %v1316_v11 = vsel %vm1300_vm12, %v1260_v42, %v1308_v4 }
 0x27d   :  { %v1269_v5 = vadd.f32 %v1268_v39, %v1263_v8 }
 0x27f   :  { %vm1301_vm14 = vcmp.gt.f32.partialorder %v1269_v5, 0.0 }
 0x281   :  { %v3246_v12 = vpop.permute.xlu1 %1280 }
 0x286   :  { %v3253_v15 = vpop.permute.xlu1 %1289 }
 0x28b   :  { %v3270_v23 = vpop.permute.xlu1 %493 }
 0x28f   :  { %v3305_v43 = vpop.permute.xlu1 %497 }
 0x296   :  { %v1227_v30 = vpop.permute.xlu0 %1226 }
 0x297   :  { %v1233_v35 = vadd.f32 %v1232_v24, %v1227_v30  ;;  %v508_v30 = vpop.permute.xlu1 %507 }
 0x299   :  { %v1305_v37 = vmul.f32 0.2, %v1233_v35  ;;  %vm1297_vm7 = vcmp.gt.f32.partialorder %v1233_v35, 0.0 }
 0x29b   :  { %v1236_v44 = vpop.permute.xlu0 %1235  ;;  %v1313_v45 = vsel %vm1297_vm7, %v1233_v35, %v1305_v37  ;;  %v3355_v35 = vsel %vm599_vm6, %v581_v9, -1e+30  ;;  %v1309_v37 = vmul.f32 0.2, %v1269_v5 }
 0x29c   :  { %v1242_v48 = vadd.f32 %v1241_v40, %v1236_v44  ;;  %v3311_v49 = vsel %vm1322_vm8, %v1313_v45, -1e+30  ;;  %v490_v40 = vadd.f32 %v3315_v50, %v3248_v13  ;;  %v582_v44 = vsel %vm550_vm13, %v462_v47, %v566_v17 }
 0x29d   :  { %v1331_v54 = vsel %vm73_vm1, %v3311_v49, -inf  ;;  %v1337_v45 = vsel %vm73_vm1, %v3351_v33, -inf  ;;  %v620_v42 = vsel %vm616_vm5, %v3355_v35, -inf  ;;  %v3373_v13 = vsel %vm1322_vm8, %v1316_v11, -1e+30 }
 0x29e   :  { %v1306_v0 = vmul.f32 0.2, %v1242_v48  ;;  %1332 = vmax.xlane.f32.xlu0 %v1331_v54  ;;  %vm1298_vm11 = vcmp.gt.f32.partialorder %v1242_v48, 0.0  ;;  %v1287_v47 = vadd.f32 %v1286_v38, %v3246_v12  ;;  %v3376_v54 = vpop.permute.xlu1 %511  ;;  %v3380_v16 = vsel %vm598_vm4, %v582_v44, -1e+30 }
 0x29f   :  { %v1317_v4 = vsel %vm1301_vm14, %v1269_v5, %v1309_v37  ;;  %v570_v7 = vmul.f32 0.2, %v490_v40  ;;  %v584_v17 = vsel %vm552_vm15, %v476_v19, %v568_v41  ;;  %vm554_vm7 = vcmp.gt.f32.partialorder %v490_v40, 0.0 }
 0x2a0   :  { %v1272_v20 = vpop.permute.xlu0 %1271  ;;  %v1314_v24 = vsel %vm1298_vm11, %v1242_v48, %v1306_v0  ;;  %v3367_v48 = vrot.slane %v3234_v61, %v3285_v28  ;;  %v3388_v12 = vrot.slane %v3234_v61, %v3321_v52  ;;  %v3394_v5 = vsel %vm1322_vm8, %v1317_v4, -1e+30 }
 0x2a1   :  { %v3342_v8 = vsel %vm1322_vm8, %v1314_v24, -1e+30  ;;  %v1278_v39 = vadd.f32 %v1277_v32, %v1272_v20  ;;  %v1340_v20 = vsel %vm73_vm1, %v3373_v13, -inf  ;;  %v623_v24 = vsel %vm616_vm5, %v3380_v16, -inf }
 0x2a2   :  { %618 = vmax.xlane.f32.xlu0 %v617_v34  ;;  %v1334_v2 = vsel %vm73_vm1, %v3342_v8, -inf  ;;  %v504_v9 = vadd.f32 %v3367_v48, %v3270_v23  ;;  %v1311_v32 = vmul.f32 0.2, %v1287_v47  ;;  %v1296_v23 = vadd.f32 %v1295_v46, %v3253_v15  ;;  %v522_v11 = vpop.permute.xlu1 %521 }
 0x2a3   :  { %1335 = vmax.xlane.f32.xlu1 %v1334_v2  ;;  %v1310_v0 = vmul.f32 0.2, %v1278_v39  ;;  %vm1302_vm3 = vcmp.gt.f32.partialorder %v1278_v39, 0.0  ;;  %v3399_v19 = vsel %vm598_vm4, %v584_v17, -1e+30  ;;  %v518_v37 = vadd.f32 %v3388_v12, %v508_v30 }
 0x2a4   :  { %v572_v2 = vmul.f32 0.2, %v504_v9  ;;  %v586_v38 = vsel %vm554_vm7, %v490_v40, %v570_v7  ;;  %vm1303_vm9 = vcmp.gt.f32.partialorder %v1287_v47, 0.0  ;;  %v1343_v41 = vsel %vm73_vm1, %v3394_v5, -inf }
 0x2a5   :  { %v1318_v34 = vsel %vm1302_vm3, %v1278_v39, %v1310_v0  ;;  %vm556_vm10 = vcmp.gt.f32.partialorder %v504_v9, 0.0  ;;  %v3406_v44 = vrot.slane %v3234_v61, %v3318_v51  ;;  %v629_v15 = vsel %vm616_vm5, %v3399_v19, -inf  ;;  %v536_v7 = vpop.permute.xlu0 %535 }
 0x2a6   :  { %1338 = vmax.xlane.f32.xlu0 %v1337_v45  ;;  %v3412_v39 = vsel %vm1322_vm8, %v1318_v34, -1e+30  ;;  %v463_v30 = vadd.f32 %v3298_v36, %v3242_v10  ;;  %v1312_v40 = vmul.f32 0.2, %v1296_v23  ;;  %v3418_v45 = vsel %vm598_vm4, %v586_v38, -1e+30 }
 0x2a7   :  { %621 = vmax.xlane.f32.xlu1 %v620_v42  ;;  %v1319_v46 = vsel %vm1303_vm9, %v1287_v47, %v1311_v32  ;;  %v574_v42 = vmul.f32 0.2, %v518_v37  ;;  %v532_v0 = vadd.f32 %v3406_v44, %v522_v11  ;;  %v588_v4 = vsel %vm556_vm10, %v504_v9, %v572_v2 }
 0x2a8   :  { %vm1304_vm11 = vcmp.gt.f32.partialorder %v1296_v23, 0.0  ;;  %v1346_v17 = vsel %vm73_vm1, %v3412_v39, -inf  ;;  %vm558_vm12 = vcmp.gt.f32.partialorder %v518_v37, 0.0  ;;  %v3425_v10 = vrot.slane %v3234_v61, %v3345_v27 }
 0x2a9   :  { %v635_v36 = vsel %vm616_vm5, %v3418_v45, -inf  ;;  %v3431_v47 = vsel %vm1322_vm8, %v1319_v46, -1e+30  ;;  %v477_v9 = vadd.f32 %v3327_v55, %v3236_v62  ;;  %v1320_v32 = vsel %vm1304_vm11, %v1296_v23, %v1312_v40 }
 0x2aa   :  { %1341 = vmax.xlane.f32.xlu0 %v1340_v20  ;;  %v567_v20 = vmul.f32 0.2, %v463_v30  ;;  %v576_v61 = vmul.f32 0.2, %v532_v0  ;;  %v546_v34 = vadd.f32 %v3425_v10, %v536_v7  ;;  %v590_v2 = vsel %vm558_vm12, %v518_v37, %v574_v42 }
 0x2ab   :  { %624 = vmax.xlane.f32.xlu1 %v623_v24  ;;  %v3437_v24 = vsel %vm598_vm4, %v588_v4, -1e+30  ;;  %vm551_vm13 = vcmp.gt.f32.partialorder %v463_v30, 0.0  ;;  %v1349_v38 = vsel %vm73_vm1, %v3431_v47, -inf  ;;  %vm560_vm14 = vcmp.gt.f32.partialorder %v532_v0, 0.0 }
 0x2ac   :  { %v641_v11 = vsel %vm616_vm5, %v3437_v24, -inf  ;;  %v3446_v62 = vsel %vm1322_vm8, %v1320_v32, -1e+30  ;;  %v569_v55 = vmul.f32 0.2, %v477_v9  ;;  %v491_v23 = vadd.f32 %v3315_v50, %v3238_v63 }
 0x2ad   :  { %v3452_v37 = vsel %vm598_vm4, %v590_v2, -1e+30  ;;  %v592_v40 = vsel %vm560_vm14, %v532_v0, %v576_v61  ;;  %vm553_vm15 = vcmp.gt.f32.partialorder %v477_v9, 0.0  ;;  %v1352_v46 = vsel %vm73_vm1, %v3446_v62, -inf }
 0x2ae   :  { %1344 = vmax.xlane.f32.xlu0 %v1343_v41  ;;  %v583_v41 = vsel %vm551_vm13, %v463_v30, %v567_v20  ;;  %vm562_vm3 = vcmp.gt.f32.partialorder %v546_v34, 0.0  ;;  %v647_v42 = vsel %vm616_vm5, %v3452_v37, -inf  ;;  %v571_v50 = vmul.f32 0.2, %v491_v23 }
 0x2af   :  { %630 = vmax.xlane.f32.xlu1 %v629_v15  ;;  %v578_v15 = vmul.f32 0.2, %v546_v34  ;;  %v3460_v63 = vsel %vm599_vm6, %v583_v41, -1e+30  ;;  %v505_v4 = vadd.f32 %v3367_v48, %v3305_v43  ;;  %v3466_v30 = vsel %vm598_vm4, %v592_v40, -1e+30 }
 0x2b0   :  { %v585_v0 = vsel %vm553_vm15, %v477_v9, %v569_v55  ;;  %vm555_vm8 = vcmp.gt.f32.partialorder %v491_v23, 0.0  ;;  %v653_v20 = vsel %vm616_vm5, %v3466_v30, -inf  ;;  %v519_v48 = vadd.f32 %v3388_v12, %v3376_v54 }
 0x2b1   :  { %v594_v7 = vsel %vm562_vm3, %v546_v34, %v578_v15  ;;  %v3474_v32 = vsel %vm599_vm6, %v585_v0, -1e+30  ;;  %v573_v43 = vmul.f32 0.2, %v505_v4  ;;  %v587_v61 = vsel %vm555_vm8, %v491_v23, %v571_v50 }
 0x2b2   :  { %1347 = vmax.xlane.f32.xlu0 %v1346_v17  ;;  %v626_v17 = vsel %vm616_vm5, %v3460_v63, -inf  ;;  %v3480_v9 = vsel %vm598_vm4, %v594_v7, -1e+30  ;;  %vm557_vm7 = vcmp.gt.f32.partialorder %v505_v4, 0.0  ;;  %v632_v34 = vsel %vm616_vm5, %v3474_v32, -inf }
 0x2b3   :  { %636 = vmax.xlane.f32.xlu1 %v635_v36  ;;  %v526_v36 = vpop.permute.xlu1 %525  ;;  %v659_v2 = vsel %vm616_vm5, %v3480_v9, -inf  ;;  %v589_v12 = vsel %vm557_vm7, %v505_v4, %v573_v43  ;;  %vm559_vm4 = vcmp.gt.f32.partialorder %v519_v48, 0.0  ;;  %vm1023_vm11 = vcmask 97280  }
 0x2b4   :  { %v533_v54 = vadd.f32 %v3406_v44, %v526_v36  ;;  %v3495_v41 = vsel %vm599_vm6, %v589_v12, -1e+30  ;;  %vm1028_vm12 = vcmask 162816   ;;  %vm1034_vm13 = vcmask 228352  }
 0x2b5   :  { %v644_v44 = vsel %vm616_vm5, %v3495_v41, -inf }
 0x2b6   :  { %1350 = vmax.xlane.f32.xlu0 %v1349_v38  ;;  %v3488_v38 = vsel %vm599_vm6, %v587_v61, -1e+30  ;;  %v577_v15 = vmul.f32 0.2, %v533_v54  ;;  %vm561_vm9 = vcmp.gt.f32.partialorder %v533_v54, 0.0 }
 0x2b7   :  { %642 = vmax.xlane.f32.xlu1 %v641_v11  ;;  %v575_v11 = vmul.f32 0.2, %v519_v48  ;;  %v540_v55 = vpop.permute.xlu1 %539  ;;  %v638_v23 = vsel %vm616_vm5, %v3488_v38, -inf }
 0x2b8   :  { %v547_v40 = vadd.f32 %v3425_v10, %v540_v55  ;;  %v593_v4 = vsel %vm561_vm9, %v533_v54, %v577_v15 }
 0x2b9   :  { %v3508_v10 = vsel %vm599_vm6, %v593_v4, -1e+30 }
 0x2ba   :  { %1353 = vmax.xlane.f32.xlu0 %v1352_v46  ;;  %v591_v46 = vsel %vm559_vm4, %v519_v48, %v575_v11  ;;  %v579_v50 = vmul.f32 0.2, %v547_v40  ;;  %vm563_vm10 = vcmp.gt.f32.partialorder %v547_v40, 0.0 }
 0x2bb   :  { %648 = vmax.xlane.f32.xlu1 %v647_v42  ;;  %v3502_v42 = vsel %vm599_vm6, %v591_v46, -1e+30 }
 0x2bc   :  { %v650_v0 = vsel %vm616_vm5, %v3502_v42, -inf  ;;  %v595_v7 = vsel %vm563_vm10, %v547_v40, %v579_v50 }
 0x2bd   :  { %v3514_v36 = vsel %vm599_vm6, %v595_v7, -1e+30  ;;  %vm1018_vm6 = vcmask 31744  }
 0x2be   :  { %627 = vmax.xlane.f32.xlu0 %v626_v17  ;;  %v656_v17 = vsel %vm616_vm5, %v3508_v10, -inf }
 0x2bf   :  { %654 = vmax.xlane.f32.xlu1 %v653_v20  ;;  %v662_v20 = vsel %vm616_vm5, %v3514_v36, -inf }
 0x2c2   :  { %633 = vmax.xlane.f32.xlu0 %v632_v34 }
 0x2c3   :  { %660 = vmax.xlane.f32.xlu1 %v659_v2 }
 0x2c6   :  { %639 = vmax.xlane.f32.xlu0 %v638_v23 }
 0x2ca   :  { %645 = vmax.xlane.f32.xlu0 %v644_v44 }
 0x2ce   :  { %651 = vmax.xlane.f32.xlu0 %v650_v0 }
 0x2d2   :  { %657 = vmax.xlane.f32.xlu0 %v656_v17 }
 0x2d6   :  { %663 = vmax.xlane.f32.xlu0 %v662_v20 }
 0x32b   :  { %v1333_v43 = vpop.xlane.xlu0 %1332 }
 0x32c   :  { %v1355_v48 = vsub.f32 %v3311_v49, %v1333_v43 }
 0x32e   :  { %v1363_v61 = vmul.f32 1.442695, %v1355_v48 }
 0x32f   :  { %v619_v34 = vpop.xlane.xlu0 %618 }
 0x330   :  { %v665_v2 = vsub.f32 %v3331_v1, %v619_v34  ;;  %v1336_v11 = vpop.xlane.xlu1 %1335  ;;  %2804 = vpow2.f32 %v1363_v61 }
 0x331   :  { %v1356_v54 = vsub.f32 %v3342_v8, %v1336_v11 }
 0x332   :  { %v681_v12 = vmul.f32 1.442695, %v665_v2 }
 0x333   :  { %v1365_v55 = vmul.f32 1.442695, %v1356_v54  ;;  %v1339_v23 = vpop.xlane.xlu0 %1338 }
 0x334   :  { %2806 = vpow2.f32 %v681_v12  ;;  %v1357_v15 = vsub.f32 %v3351_v33, %v1339_v23  ;;  %v622_v40 = vpop.xlane.xlu1 %621 }
 0x335   :  { %2808 = vpow2.f32 %v1365_v55  ;;  %v666_v44 = vsub.f32 %v3355_v35, %v622_v40 }
 0x336   :  { %v1367_v46 = vmul.f32 1.442695, %v1357_v15 }
 0x337   :  { %v1342_v49 = vpop.xlane.xlu0 %1341  ;;  %v683_v0 = vmul.f32 1.442695, %v666_v44 }
 0x338   :  { %2810 = vpow2.f32 %v1367_v46  ;;  %v1358_v50 = vsub.f32 %v3373_v13, %v1342_v49  ;;  %v625_v1 = vpop.xlane.xlu1 %624 }
 0x339   :  { %v667_v8 = vsub.f32 %v3380_v16, %v625_v1 }
 0x33a   :  { %v1369_v4 = vmul.f32 1.442695, %v1358_v50  ;;  %v2805_v33 = vpop.eup %2804 }
 0x33b   :  { %v1345_v7 = vpop.xlane.xlu0 %1344  ;;  %v685_v35 = vmul.f32 1.442695, %v667_v8  ;;  %v3537_v12 = vmul.f32 %v2805_v33, %v3290_v31 }
 0x33c   :  { %2812 = vpow2.f32 %v1369_v4  ;;  %v1359_v17 = vsub.f32 %v3394_v5, %v1345_v7  ;;  %v631_v20 = vpop.xlane.xlu1 %630 }
 0x33d   :  { %2814 = vpow2.f32 %v683_v0  ;;  %v669_v34 = vsub.f32 %v3399_v19, %v631_v20  ;;  %v1387_v49 = vsel %vm73_vm1, %v3537_v12, 0.0 }
 0x33e   :  { %v2807_v43 = vpop.eup %2806  ;;  %v1371_v48 = vmul.f32 1.442695, %v1359_v17 }
 0x33f   :  { %v2809_v61 = vpop.eup %2808  ;;  %v1348_v2 = vpop.xlane.xlu0 %1347  ;;  %v3528_v13 = vmul.f32 %v2807_v43, %v3277_v25  ;;  %v689_v15 = vmul.f32 1.442695, %v669_v34 }
 0x340   :  { %2816 = vpow2.f32 %v1371_v48  ;;  %v1360_v16 = vsub.f32 %v3412_v39, %v1348_v2  ;;  %v637_v11 = vpop.xlane.xlu1 %636  ;;  %v3532_v54 = vmul.f32 %v2809_v61, %v3290_v31 }
 0x341   :  { %v729_v5 = vsel %vm616_vm5, %v3528_v13, 0.0  ;;  %2818 = vpow2.f32 %v685_v35  ;;  %v671_v39 = vsub.f32 %v3418_v45, %v637_v11 }
 0x342   :  { %v2811_v55 = vpop.eup %2810  ;;  %v1373_v23 = vmul.f32 1.442695, %v1360_v16  ;;  %730 = vadd.xlane.f32.xlu1 %v729_v5  ;;  %v1390_v19 = vsel %vm73_vm1, %v3532_v54, 0.0 }
 0x343   :  { %v1351_v40 = vpop.xlane.xlu0 %1350  ;;  %1391 = vadd.xlane.f32.xlu0 %v1390_v19  ;;  %v3546_v50 = vmul.f32 %v2811_v55, %v3290_v31  ;;  %v693_v0 = vmul.f32 1.442695, %v671_v39 }
 0x344   :  { %2820 = vpow2.f32 %v1373_v23  ;;  %v1361_v46 = vsub.f32 %v3431_v47, %v1351_v40  ;;  %v643_v44 = vpop.xlane.xlu1 %642 }
 0x345   :  { %2822 = vpow2.f32 %v689_v15  ;;  %v673_v8 = vsub.f32 %v3437_v24, %v643_v44  ;;  %v1393_v33 = vsel %vm73_vm1, %v3546_v50, 0.0 }
 0x346   :  { %v2813_v1 = vpop.eup %2812  ;;  %v1375_v4 = vmul.f32 1.442695, %v1361_v46  ;;  %1388 = vadd.xlane.f32.xlu1 %v1387_v49 }
 0x347   :  { %v1354_v45 = vpop.xlane.xlu0 %1353  ;;  %v3550_v7 = vmul.f32 %v2813_v1, %v3290_v31  ;;  %v2815_v20 = vpop.eup %2814  ;;  %v697_v24 = vmul.f32 1.442695, %v673_v8 }
 0x348   :  { %2824 = vpow2.f32 %v1375_v4  ;;  %v1362_v47 = vsub.f32 %v3446_v62, %v1354_v45  ;;  %v649_v17 = vpop.xlane.xlu1 %648  ;;  %v3565_v55 = vmul.f32 %v2815_v20, %v3282_v26 }
 0x349   :  { %v1396_v43 = vsel %vm73_vm1, %v3550_v7, 0.0  ;;  %2826 = vpow2.f32 %v693_v0  ;;  %v675_v35 = vsub.f32 %v3452_v37, %v649_v17 }
 0x34a   :  { %v2817_v48 = vpop.eup %2816  ;;  %v1377_v61 = vmul.f32 1.442695, %v1362_v47  ;;  %1394 = vadd.xlane.f32.xlu1 %v1393_v33  ;;  %1397 = vadd.xlane.f32.xlu0 %v1396_v43  ;;  %v732_v1 = vsel %vm616_vm5, %v3565_v55, 0.0 }
 0x34b   :  { %v628_v34 = vpop.xlane.xlu0 %627  ;;  %v3559_v2 = vmul.f32 %v2817_v48, %v3290_v31  ;;  %v2819_v11 = vpop.eup %2818  ;;  %v701_v37 = vmul.f32 1.442695, %v675_v35 }
 0x34c   :  { %2828 = vpow2.f32 %v1377_v61  ;;  %v668_v62 = vsub.f32 %v3460_v63, %v628_v34  ;;  %v655_v16 = vpop.xlane.xlu1 %654  ;;  %v3577_v4 = vmul.f32 %v2819_v11, %v3277_v25 }
 0x34d   :  { %v1399_v5 = vsel %vm73_vm1, %v3559_v2, 0.0  ;;  %2830 = vpow2.f32 %v697_v24  ;;  %v677_v15 = vsub.f32 %v3466_v30, %v655_v16 }
 0x34e   :  { %v2821_v23 = vpop.eup %2820  ;;  %v687_v19 = vmul.f32 1.442695, %v668_v62  ;;  %1400 = vadd.xlane.f32.xlu1 %v1399_v5  ;;  %v735_v43 = vsel %vm616_vm5, %v3577_v4, 0.0 }
 0x34f   :  { %v634_v39 = vpop.xlane.xlu0 %633  ;;  %v3569_v40 = vmul.f32 %v2821_v23, %v3290_v31  ;;  %v2823_v44 = vpop.eup %2822  ;;  %v705_v8 = vmul.f32 1.442695, %v677_v15 }
 0x350   :  { %2832 = vpow2.f32 %v687_v19  ;;  %v670_v63 = vsub.f32 %v3474_v32, %v634_v39  ;;  %v661_v46 = vpop.xlane.xlu1 %660  ;;  %v3589_v48 = vmul.f32 %v2823_v44, %v3277_v25 }
 0x351   :  { %v1402_v49 = vsel %vm73_vm1, %v3569_v40, 0.0  ;;  %2834 = vpow2.f32 %v701_v37  ;;  %v679_v45 = vsub.f32 %v3480_v9, %v661_v46 }
 0x352   :  { %v2825_v0 = vpop.eup %2824  ;;  %v691_v30 = vmul.f32 1.442695, %v670_v63  ;;  %1403 = vadd.xlane.f32.xlu0 %v1402_v49  ;;  %733 = vadd.xlane.f32.xlu1 %v732_v1  ;;  %v741_v11 = vsel %vm616_vm5, %v3589_v48, 0.0 }
 0x353   :  { %v640_v32 = vpop.xlane.xlu0 %639  ;;  %v3581_v47 = vmul.f32 %v2825_v0, %v3290_v31  ;;  %v2827_v20 = vpop.eup %2826  ;;  %v709_v9 = vmul.f32 1.442695, %v679_v45 }
 0x354   :  { %2836 = vpow2.f32 %v691_v30  ;;  %v672_v17 = vsub.f32 %v3488_v38, %v640_v32  ;;  %v3600_v5 = vmul.f32 %v2827_v20, %v3277_v25 }
 0x355   :  { %v1405_v33 = vsel %vm73_vm1, %v3581_v47, 0.0  ;;  %2838 = vpow2.f32 %v705_v8 }
 0x356   :  { %v2829_v61 = vpop.eup %2828  ;;  %v695_v24 = vmul.f32 1.442695, %v672_v17  ;;  %1406 = vadd.xlane.f32.xlu0 %v1405_v33  ;;  %736 = vadd.xlane.f32.xlu1 %v735_v43  ;;  %v747_v63 = vsel %vm616_vm5, %v3600_v5, 0.0 }
 0x357   :  { %v646_v35 = vpop.xlane.xlu0 %645  ;;  %v3592_v34 = vmul.f32 %v2829_v61, %v3290_v31  ;;  %v2831_v62 = vpop.eup %2830 }
 0x358   :  { %2840 = vpow2.f32 %v695_v24  ;;  %v674_v38 = vsub.f32 %v3495_v41, %v646_v35  ;;  %v3611_v46 = vmul.f32 %v2831_v62, %v3277_v25 }
 0x359   :  { %v1408_v16 = vsel %vm73_vm1, %v3592_v34, 0.0  ;;  %2842 = vpow2.f32 %v709_v9 }
 0x35a   :  { %v2833_v23 = vpop.eup %2832  ;;  %v699_v19 = vmul.f32 1.442695, %v674_v38  ;;  %1409 = vadd.xlane.f32.xlu0 %v1408_v16  ;;  %742 = vadd.xlane.f32.xlu1 %v741_v11  ;;  %v753_v45 = vsel %vm616_vm5, %v3611_v46, 0.0 }
 0x35b   :  { %v652_v31 = vpop.xlane.xlu0 %651  ;;  %v3603_v37 = vmul.f32 %v2833_v23, %v3282_v26  ;;  %v2835_v15 = vpop.eup %2834 }
 0x35c   :  { %2844 = vpow2.f32 %v699_v19  ;;  %v676_v41 = vsub.f32 %v3502_v42, %v652_v31  ;;  %v3622_v32 = vmul.f32 %v2835_v15, %v3277_v25 }
 0x35d   :  { %v738_v39 = vsel %vm616_vm5, %v3603_v37, 0.0 }
 0x35e   :  { %v2837_v44 = vpop.eup %2836  ;;  %v703_v49 = vmul.f32 1.442695, %v676_v41  ;;  %739 = vadd.xlane.f32.xlu0 %v738_v39  ;;  %748 = vadd.xlane.f32.xlu1 %v747_v63  ;;  %v759_v9 = vsel %vm616_vm5, %v3622_v32, 0.0 }
 0x35f   :  { %v658_v1 = vpop.xlane.xlu0 %657  ;;  %v3614_v0 = vmul.f32 %v2837_v44, %v3282_v26  ;;  %v2839_v30 = vpop.eup %2838 }
 0x360   :  { %2846 = vpow2.f32 %v703_v49  ;;  %v678_v42 = vsub.f32 %v3508_v10, %v658_v1  ;;  %v3633_v35 = vmul.f32 %v2839_v30, %v3277_v25 }
 0x361   :  { %v744_v8 = vsel %vm616_vm5, %v3614_v0, 0.0 }
 0x362   :  { %v2841_v17 = vpop.eup %2840  ;;  %v707_v20 = vmul.f32 1.442695, %v678_v42  ;;  %745 = vadd.xlane.f32.xlu0 %v744_v8  ;;  %754 = vadd.xlane.f32.xlu1 %v753_v45  ;;  %v765_v11 = vsel %vm616_vm5, %v3633_v35, 0.0 }
 0x363   :  { %v664_v33 = vpop.xlane.xlu0 %663  ;;  %v3625_v43 = vmul.f32 %v2841_v17, %v3282_v26  ;;  %v2843_v61 = vpop.eup %2842 }
 0x364   :  { %2848 = vpow2.f32 %v707_v20  ;;  %v680_v10 = vsub.f32 %v3514_v36, %v664_v33  ;;  %v3643_v23 = vmul.f32 %v2843_v61, %v3277_v25 }
 0x365   :  { %v750_v24 = vsel %vm616_vm5, %v3625_v43, 0.0 }
 0x366   :  { %v2845_v38 = vpop.eup %2844  ;;  %v711_v62 = vmul.f32 1.442695, %v680_v10  ;;  %751 = vadd.xlane.f32.xlu0 %v750_v24  ;;  %760 = vadd.xlane.f32.xlu1 %v759_v9  ;;  %v771_v15 = vsel %vm616_vm5, %v3643_v23, 0.0 }
 0x367   :  { %v3636_v16 = vmul.f32 %v2845_v38, %v3282_v26 }
 0x368   :  { %2850 = vpow2.f32 %v711_v62 }
 0x369   :  { %v756_v36 = vsel %vm616_vm5, %v3636_v16, 0.0 }
 0x36a   :  { %v2847_v19 = vpop.eup %2846  ;;  %757 = vadd.xlane.f32.xlu0 %v756_v36  ;;  %766 = vadd.xlane.f32.xlu1 %v765_v11  ;;  %v1646_v36 = vld [vmem:[%s3953_s13] sm:$0xff]  ;;  %v1647_v11 = vld [vmem:[%s3953_s13 + $0x8] sm:$0xff] }
 0x36b   :  { %v3646_v31 = vmul.f32 %v2847_v19, %v3282_v26 }
 0x36d   :  { %v762_v41 = vsel %vm616_vm5, %v3646_v31, 0.0 }
 0x36e   :  { %v2849_v39 = vpop.eup %2848  ;;  %763 = vadd.xlane.f32.xlu0 %v762_v41  ;;  %772 = vadd.xlane.f32.xlu1 %v771_v15 }
 0x36f   :  { %v3653_v63 = vmul.f32 %v2849_v39, %v3282_v26 }
 0x371   :  { %v768_v25 = vsel %vm616_vm5, %v3653_v63, 0.0 }
 0x372   :  { %v2851_v44 = vpop.eup %2850  ;;  %769 = vadd.xlane.f32.xlu0 %v768_v25 }
 0x373   :  { %v3658_v49 = vmul.f32 %v2851_v44, %v3282_v26 }
 0x375   :  { %v774_v1 = vsel %vm616_vm5, %v3658_v49, 0.0 }
 0x376   :  { %775 = vadd.xlane.f32.xlu0 %v774_v1 }
 0x3cf   :  { %v731_v42 = vpop.xlane.xlu1 %730 }
 0x3d0   :  { %v777_v30 = vmax.f32 %v731_v42, 1e-30  ;;  %v1392_v8 = vpop.xlane.xlu0 %1391 }
 0x3d1   :  { %v1412_v45 = vmax.f32 %v1392_v8, 1e-30 }
 0x3d2   :  { %2852 = vrcp.f32 %v777_v30 }
 0x3d3   :  { %v1389_v17 = vpop.xlane.xlu1 %1388  ;;  %2854 = vrcp.f32 %v1412_v45  ;;  %v1648_v45 = vld [vmem:[%s3953_s13 + $0x10] sm:$0xff] }
 0x3d4   :  { %v1411_v20 = vmax.f32 %v1389_v17, 1e-30  ;;  %v1649_v17 = vld [vmem:[%s3953_s13 + $0x18] sm:$0xff] }
 0x3d6   :  { %2856 = vrcp.f32 %v1411_v20 }
 0x3d7   :  { %v1398_v33 = vpop.xlane.xlu0 %1397  ;;  %v1395_v10 = vpop.xlane.xlu1 %1394 }
 0x3d8   :  { %v1414_v61 = vmax.f32 %v1398_v33, 1e-30  ;;  %v1413_v24 = vmax.f32 %v1395_v10, 1e-30 }
 0x3da   :  { %2858 = vrcp.f32 %v1414_v61 }
 0x3db   :  { %2860 = vrcp.f32 %v1413_v24  ;;  %v1401_v26 = vpop.xlane.xlu1 %1400  ;;  %v2742_v24 = vpack.c.bf16 %v1649_v17, %v1648_v45 }
 0x3dc   :  { %v2853_v9 = vpop.eup %2852  ;;  %v1415_v38 = vmax.f32 %v1401_v26, 1e-30 }
 0x3dd   :  { %v794_v62 = vmul.f32 %v2853_v9, %v3528_v13  ;;  %v2855_v19 = vpop.eup %2854  ;;  %v2739_v13 = vpack.c.bf16 %v1647_v11, %v1646_v36 }
 0x3de   :  { %2862 = vrcp.f32 %v1415_v38  ;;  %v1422_v42 = vmul.f32 %v2855_v19, %v3532_v54 }
 0x3df   :  { %v1404_v41 = vpop.xlane.xlu0 %1403  ;;  %2573 = vmatprep.mubr.msk.f32.mxu0 %vm616_vm5, %v794_v62  ;;  %v734_v15 = vpop.xlane.xlu1 %733 }
 0x3e0   :  { %v2857_v39 = vpop.eup %2856  ;;  %v1416_v25 = vmax.f32 %v1404_v41, 1e-30  ;;  %v778_v44 = vmax.f32 %v734_v15, 1e-30 }
 0x3e1   :  { %v1420_v1 = vmul.f32 %v2857_v39, %v3537_v12 }
 0x3e2   :  { %2864 = vrcp.f32 %v1416_v25 }
 0x3e3   :  { %2866 = vrcp.f32 %v778_v44  ;;  %v1407_v30 = vpop.xlane.xlu0 %1406  ;;  %2623 = vmatprep.mubr.msk.f32.mxu1 %vm73_vm1, %v1420_v1  ;;  %v737_v8 = vpop.xlane.xlu1 %736 }
 0x3e4   :  { %v2859_v20 = vpop.eup %2858  ;;  %v1417_v33 = vmax.f32 %v1407_v30, 1e-30  ;;  %v779_v12 = vmax.f32 %v737_v8, 1e-30  ;;  %2624 = vmatmul.mubr.msk.f32.vlgmr.msra.gmra.mrb[8].mxu1 %vm73_vm1, %v1422_v42  ;;  %v1574_v42 = vld [vmem:[%s3952_s12 + $0x10] sm:$0xff]  ;;  %v1575_v30 = vld [vmem:[%s3952_s12 + $0x18] sm:$0xff] }
 0x3e5   :  { %v2861_v10 = vpop.eup %2860  ;;  %v1426_v54 = vmul.f32 %v2859_v20, %v3550_v7  ;;  %2740 = vmatpush3.bf16.msra.mxu1 %v2739_v13  ;;  %v1573_v7 = vld [vmem:[%s3952_s12 + $0x8] sm:$0xff] }
 0x3e6   :  { %2868 = vrcp.f32 %v1417_v33  ;;  %v1424_v61 = vmul.f32 %v2861_v10, %v3546_v50  ;;  %2741 = vmatprep.subr.bf16.mxu1 %v2998_v3  ;;  %v1572_v50 = vld [vmem:[%s3952_s12] sm:$0xff] }
 0x3e7   :  { %2870 = vrcp.f32 %v779_v12  ;;  %v1410_v26 = vpop.xlane.xlu0 %1409  ;;  %v743_v9 = vpop.xlane.xlu1 %742  ;;  %v2733_v1 = vpack.c.bf16 %v1573_v7, %v1572_v50  ;;  %v2736_v12 = vpack.c.bf16 %v1575_v30, %v1574_v42 }
 0x3e8   :  { %v2863_v38 = vpop.eup %2862  ;;  %v1418_v62 = vmax.f32 %v1410_v26, 1e-30  ;;  %2626 = vmatprep.mubr.msk.f32.mxu1 %vm73_vm1, %v1424_v61  ;;  %v781_v36 = vmax.f32 %v743_v9, 1e-30 }
 0x3e9   :  { %2627 = vmatmul.mubr.msk.f32.gmra.mrb[10].mxu1 %vm73_vm1, %v1426_v54  ;;  %v1428_v11 = vmul.f32 %v2863_v38, %v3559_v2 }
 0x3ea   :  { %2872 = vrcp.f32 %v1418_v62  ;;  %2743 = vmatpush3.bf16.msra.mxu1 %v2742_v24 }
 0x3eb   :  { %v740_v19 = vpop.xlane.xlu0 %739  ;;  %2629 = vmatprep.mubr.msk.f32.mxu1 %vm73_vm1, %v1428_v11  ;;  %v749_v41 = vpop.xlane.xlu1 %748  ;;  %2874 = vrcp.f32 %v781_v36 }
 0x3ec   :  { %v2865_v15 = vpop.eup %2864  ;;  %v780_v39 = vmax.f32 %v740_v19, 1e-30  ;;  %v783_v44 = vmax.f32 %v749_v41, 1e-30 }
 0x3ed   :  { %v2867_v25 = vpop.eup %2866  ;;  %v1430_v2 = vmul.f32 %v2865_v15, %v3569_v40 }
 0x3ee   :  { %2876 = vrcp.f32 %v780_v39  ;;  %v796_v13 = vmul.f32 %v2867_v25, %v3565_v55 }
 0x3ef   :  { %v746_v8 = vpop.xlane.xlu0 %745  ;;  %2630 = vmatmul.mubr.msk.f32.gmra.mrb[12].mxu1 %vm73_vm1, %v1430_v2  ;;  %v755_v45 = vpop.xlane.xlu1 %754  ;;  %2878 = vrcp.f32 %v783_v44 }
 0x3f0   :  { %v2869_v17 = vpop.eup %2868  ;;  %v782_v20 = vmax.f32 %v746_v8, 1e-30  ;;  %2574 = vmatmul.mubr.msk.f32.vlgmr.msra.gmra.mrb[4].mxu0 %vm616_vm5, %v796_v13  ;;  %v785_v55 = vmax.f32 %v755_v45, 1e-30 }
 0x3f1   :  { %v2871_v40 = vpop.eup %2870  ;;  %2734 = vmatpush3.bf16.msra.mxu0 %v2733_v1  ;;  %v1432_v33 = vmul.f32 %v2869_v17, %v3581_v47 }
 0x3f2   :  { %2880 = vrcp.f32 %v782_v20  ;;  %2735 = vmatprep.subr.bf16.mxu0 %v2998_v3  ;;  %v798_v10 = vmul.f32 %v2871_v40, %v3577_v4 }
 0x3f3   :  { %v752_v54 = vpop.xlane.xlu0 %751  ;;  %2632 = vmatprep.mubr.msk.f32.mxu1 %vm73_vm1, %v1432_v33  ;;  %v761_v61 = vpop.xlane.xlu1 %760  ;;  %2882 = vrcp.f32 %v785_v55 }
 0x3f4   :  { %v2873_v24 = vpop.eup %2872  ;;  %v784_v26 = vmax.f32 %v752_v54, 1e-30  ;;  %2576 = vmatprep.mubr.msk.f32.mxu0 %vm616_vm5, %v798_v10  ;;  %v787_v9 = vmax.f32 %v761_v61, 1e-30 }
 0x3f5   :  { %2737 = vmatpush3.bf16.msra.mxu0 %v2736_v12  ;;  %v1434_v38 = vmul.f32 %v2873_v24, %v3592_v34  ;;  %v2875_v47 = vpop.eup %2874 }
 0x3f6   :  { %2884 = vrcp.f32 %v784_v26  ;;  %2657 = vmatprep.subr.mxu0 %v3180_v29  ;;  %v802_v34 = vmul.f32 %v2875_v47, %v3589_v48 }
 0x3f7   :  { %v758_v3 = vpop.xlane.xlu0 %757  ;;  %2633 = vmatmul.mubr.msk.f32.gmra.mrb[14].mxu1 %vm73_vm1, %v1434_v38  ;;  %v767_v4 = vpop.xlane.xlu1 %766  ;;  %2886 = vrcp.f32 %v787_v9 }
 0x3f8   :  { %v2877_v62 = vpop.eup %2876  ;;  %v786_v36 = vmax.f32 %v758_v3, 1e-30  ;;  %2654 = vmatprep.mubr.msk.f32.mxu1 %vm2999_vm0, %v3000_v6  ;;  %v789_v11 = vmax.f32 %v767_v4, 1e-30 }
 0x3f9   :  { %v800_v50 = vmul.f32 %v2877_v62, %v3603_v37  ;;  %v2879_v7 = vpop.eup %2878 }
 0x3fa   :  { %2888 = vrcp.f32 %v786_v36  ;;  %v806_v37 = vmul.f32 %v2879_v7, %v3600_v5 }
 0x3fb   :  { %v764_v19 = vpop.xlane.xlu0 %763  ;;  %2577 = vmatmul.mubr.msk.f32.gmra.mrb[6].mxu0 %vm616_vm5, %v800_v50  ;;  %2655 = vmatmul.mubr.msk.f32.vlgmr.msra.gmra.mrb[16].mxu1 %vm243_vm2, %v3180_v29  ;;  %v773_v41 = vpop.xlane.xlu1 %772  ;;  %2890 = vrcp.f32 %v789_v11 }
 0x3fc   :  { %v2881_v15 = vpop.eup %2880  ;;  %v788_v39 = vmax.f32 %v764_v19, 1e-30  ;;  %2579 = vmatprep.mubr.msk.f32.mxu0 %vm616_vm5, %v802_v34  ;;  %v791_v25 = vmax.f32 %v773_v41, 1e-30 }
 0x3fd   :  { %v804_v44 = vmul.f32 %v2881_v15, %v3614_v0  ;;  %v2883_v48 = vpop.eup %2882 }
 0x3fe   :  { %2892 = vrcp.f32 %v788_v39  ;;  %v810_v30 = vmul.f32 %v2883_v48, %v3611_v46 }
 0x3ff   :  { %v770_v2 = vpop.xlane.xlu0 %769  ;;  %2580 = vmatmul.mubr.msk.f32.gmra.mrb[8].mxu0 %vm616_vm5, %v804_v44  ;;  %2894 = vrcp.f32 %v791_v25 }
 0x400   :  { %v2885_v1 = vpop.eup %2884  ;;  %v790_v13 = vmax.f32 %v770_v2, 1e-30  ;;  %2582 = vmatprep.mubr.msk.f32.mxu0 %vm616_vm5, %v806_v37 }
 0x401   :  { %v808_v42 = vmul.f32 %v2885_v1, %v3625_v43  ;;  %v2887_v8 = vpop.eup %2886 }
 0x402   :  { %2896 = vrcp.f32 %v790_v13  ;;  %v814_v20 = vmul.f32 %v2887_v8, %v3622_v32 }
 0x403   :  { %v776_v45 = vpop.xlane.xlu0 %775  ;;  %2583 = vmatmul.mubr.msk.f32.gmra.mrb[10].mxu0 %vm616_vm5, %v808_v42 }
 0x404   :  { %v2889_v0 = vpop.eup %2888  ;;  %v792_v5 = vmax.f32 %v776_v45, 1e-30  ;;  %2585 = vmatprep.mubr.msk.f32.mxu0 %vm616_vm5, %v810_v30 }
 0x405   :  { %v812_v17 = vmul.f32 %v2889_v0, %v3636_v16  ;;  %v2891_v40 = vpop.eup %2890 }
 0x406   :  { %2898 = vrcp.f32 %v792_v5  ;;  %v818_v55 = vmul.f32 %v2891_v40, %v3633_v35 }
 0x407   :  { %2586 = vmatmul.mubr.msk.f32.gmra.mrb[12].mxu0 %vm616_vm5, %v812_v17 }
 0x408   :  { %v2893_v43 = vpop.eup %2892  ;;  %2588 = vmatprep.mubr.msk.f32.mxu0 %vm616_vm5, %v814_v20 }
 0x409   :  { %v816_v46 = vmul.f32 %v2893_v43, %v3646_v31  ;;  %v2895_v33 = vpop.eup %2894 }
 0x40a   :  { %v822_v32 = vmul.f32 %v2895_v33, %v3643_v23 }
 0x40b   :  { %2589 = vmatmul.mubr.msk.f32.gmra.mrb[14].mxu0 %vm616_vm5, %v816_v46 }
 0x40c   :  { %v2897_v12 = vpop.eup %2896  ;;  %2591 = vmatprep.mubr.msk.f32.mxu0 %vm616_vm5, %v818_v55 }
 0x40d   :  { %v820_v16 = vmul.f32 %v2897_v12, %v3653_v63 }
 0x40f   :  { %2592 = vmatmul.mubr.msk.f32.gmra.mrb[16].mxu0 %vm616_vm5, %v820_v16 }
 0x410   :  { %v2899_v10 = vpop.eup %2898  ;;  %2594 = vmatprep.mubr.msk.f32.mxu0 %vm616_vm5, %v822_v32 }
 0x411   :  { %v824_v54 = vmul.f32 %v2899_v10, %v3658_v49 }
 0x413   :  { %2595 = vmatmul.mubr.msk.f32.gmra.mrb[18].mxu0 %vm616_vm5, %v824_v54 }
 0x414   :  { %2643 = vmatprep.mubr.msk.f32.mxu0 %vm2999_vm0, %v3000_v6  ;;  %vm1031_vm0 = vcmask 195584  }
 0x417   :  { %2644 = vmatmul.mubr.msk.f32.vlgmr.msra.gmra.mrb[20].mxu0 %vm243_vm2, %v3180_v29 }
 0x418   :  { %2658 = vmatpush3.msra.mxu0 %v3180_v29 }
 0x4b7   :  { %v2625_v35 = vpop.f32.mrb[8].mxu1 }
 0x4b8   :  { %v1525_v23 = vpop.f32.mrb[9].mxu1 }
 0x4b9   :  { %v1564_v31 = vsel %vm1018_vm6, %v1525_v23, %v2625_v35 }
 0x4bc   :  { %v2628_v63 = vpop.f32.mrb[10].mxu1 }
 0x4bd   :  { %v1535_v61 = vpop.f32.mrb[11].mxu1 }
 0x4be   :  { %v1565_v49 = vsel %vm616_vm5, %v1564_v31, %v1535_v61  ;;  %v3788_v61 = vld [vmem:[%s3954_s14] sm:$0xff] }
 0x4bf   :  { %v1566_v24 = vsel %vm1023_vm11, %v1565_v49, %v2628_v63  ;;  %vm1850_vm14 = vcmp.gt.f32.partialorder %v3788_v61, 0.0 }
 0x4c2   :  { %v2631_v26 = vpop.f32.mrb[12].mxu1 }
 0x4c3   :  { %v2575_v6 = vpop.f32.mrb[4].mxu0  ;;  %v1545_v9 = vpop.f32.mrb[13].mxu1 }
 0x4c4   :  { %v939_v38 = vpop.f32.mrb[5].mxu0  ;;  %v1567_v47 = vsel %vm73_vm1, %v1566_v24, %v1545_v9 }
 0x4c5   :  { %v1568_v29 = vsel %vm1028_vm12, %v1567_v47, %v2631_v26 }
 0x4ca   :  { %v2634_v3 = vpop.f32.mrb[14].mxu1 }
 0x4cb   :  { %v1555_v4 = vpop.f32.mrb[15].mxu1 }
 0x4cc   :  { %v1569_v62 = vsel %vm1031_vm0, %v1568_v29, %v1555_v4 }
 0x4cd   :  { %v3753_v36 = vsel %vm1034_vm13, %v1569_v62, %v2634_v3 }
 0x4ce   :  { %v1571_v11 = vmax.f32 %v3753_v36, 0.0  ;;  %v2578_v50 = vpop.f32.mrb[6].mxu0  ;;  %v1716_v34 = vpop.f32.mrb[16].mxu1 }
 0x4cf   :  { %v1020_v7 = vsel %vm1018_vm6, %v2575_v6, %v2578_v50  ;;  %1763 = vperm.xlu0 %2796, %v1716_v34   ;;  %1754 = vperm.xlu1 %2795, %v1716_v34   ;;  %v949_v19 = vpop.f32.mrb[7].mxu0  ;;  %v2656_v41 = vpop.f32.mrb[17].mxu1 }
 0x4d0   :  { %v1019_v15 = vsel %vm1018_vm6, %v939_v38, %v949_v19  ;;  %2679 = vmatprep.mubr.msk.f32.mxu1 %vm243_vm2, %v1571_v11 }
 0x4d2   :  { %v2581_v39 = vpop.f32.mrb[8].mxu0 }
 0x4d3   :  { %v1022_v25 = vsel %vm616_vm5, %v1020_v7, %v2581_v39  ;;  %2797 = vset.pattern.permute.xlu1 %v3004_v56  ;;  %v959_v44 = vpop.f32.mrb[9].mxu0  ;;  %2803 = vset.pattern.permute.xlu0 %v3007_v59 }
 0x4d4   :  { %v1021_v37 = vsel %vm616_vm5, %v1019_v15, %v959_v44  ;;  %1772 = vperm.xlu1 %2797, %v1716_v34  }
 0x4d6   :  { %v2584_v48 = vpop.f32.mrb[10].mxu0 }
 0x4d7   :  { %v1025_v2 = vsel %vm1023_vm11, %v1022_v25, %v2584_v48  ;;  %v969_v1 = vpop.f32.mrb[11].mxu0 }
 0x4d8   :  { %v1024_v13 = vsel %vm1023_vm11, %v1021_v37, %v969_v1  ;;  %2798 = vset.pattern.permute.xlu1 %v3003_v53 }
 0x4d9   :  { %1781 = vperm.xlu1 %2798, %v1716_v34  }
 0x4da   :  { %v2587_v42 = vpop.f32.mrb[12].mxu0 }
 0x4db   :  { %v1027_v30 = vsel %vm73_vm1, %v1025_v2, %v2587_v42  ;;  %v979_v8 = vpop.f32.mrb[13].mxu0 }
 0x4dc   :  { %v1026_v56 = vsel %vm73_vm1, %v1024_v13, %v979_v8 }
 0x4dd   :  { %2799 = vset.pattern.permute.xlu1 %v3005_v57 }
 0x4de   :  { %1790 = vperm.xlu1 %2799, %v1716_v34   ;;  %v2590_v45 = vpop.f32.mrb[14].mxu0 }
 0x4df   :  { %v1030_v0 = vsel %vm1028_vm12, %v1027_v30, %v2590_v45  ;;  %v989_v5 = vpop.f32.mrb[15].mxu0 }
 0x4e0   :  { %v1029_v17 = vsel %vm1028_vm12, %v1026_v56, %v989_v5 }
 0x4e2   :  { %2800 = vset.pattern.permute.xlu1 %v3008_v60  ;;  %v2593_v20 = vpop.f32.mrb[16].mxu0 }
 0x4e3   :  { %v1033_v53 = vsel %vm1031_vm0, %v1030_v0, %v2593_v20  ;;  %1799 = vperm.xlu1 %2800, %v1716_v34   ;;  %v999_v40 = vpop.f32.mrb[17].mxu0 }
 0x4e4   :  { %v1032_v43 = vsel %vm1031_vm0, %v1029_v17, %v999_v40 }
 0x4e6   :  { %v2596_v46 = vpop.f32.mrb[18].mxu0 }
 0x4e7   :  { %v3777_v55 = vsel %vm1034_vm13, %v1033_v53, %v2596_v46  ;;  %2801 = vset.pattern.permute.xlu1 %v3006_v58  ;;  %v1009_v57 = vpop.f32.mrb[19].mxu0 }
 0x4e8   :  { %v3781_v33 = vsel %vm1034_vm13, %v1032_v43, %v1009_v57  ;;  %1808 = vperm.xlu1 %2801, %v1716_v34  }
 0x4ea   :  { %v1642_v12 = vpop.f32.mrb[20].mxu0 }
 0x4eb   :  { %v2645_v60 = vpop.f32.mrb[21].mxu0 }
 0x4ec   :  { %2802 = vset.pattern.permute.xlu1 %v3007_v59 }
 0x4ed   :  { %1817 = vperm.xlu1 %2802, %v1716_v34  }
 0x516   :  { %1720 = vxpose.xlu1.b32.start.end [1/1] (short) (narrow) %v1642_v12, 8 }
 0x54e   :  { %v1755_v16 = vpop.permute.xlu1 %1754  ;;  %v1764_v26 = vpop.permute.xlu0 %1763 }
 0x553   :  { %v1773_v32 = vpop.permute.xlu1 %1772 }
 0x558   :  { %v1782_v10 = vpop.permute.xlu1 %1781 }
 0x55d   :  { %v1791_v54 = vpop.permute.xlu1 %1790 }
 0x562   :  { %v1800_v35 = vpop.permute.xlu1 %1799 }
 0x567   :  { %v1809_v23 = vpop.permute.xlu1 %1808 }
 0x56c   :  { %v1818_v31 = vpop.permute.xlu1 %1817 }
 0x596   :  { %v1736_v63 = vpop.trf.xlu1 }
 0x597   :  { %v1787_v58 = vrot.slane %v1736_v63, %v3268_v22  ;;  %v1760_v49 = vrot.slane %v1736_v63, %v3251_v14  ;;  %v1769_v59 = vrot.slane %v1736_v63, %v3265_v21  ;;  %v1778_v24 = vrot.slane %v1736_v63, %v3260_v18 }
 0x598   :  { %v1796_v6 = vrot.slane %v1736_v63, %v3285_v28  ;;  %v1805_v62 = vrot.slane %v1736_v63, %v3321_v52  ;;  %v1814_v37 = vrot.slane %v1736_v63, %v3318_v51  ;;  %v1823_v30 = vrot.slane %v1736_v63, %v3345_v27 }
 0x599   :  { %v1788_v9 = vadd.f32 %v1787_v58, %v1782_v10  ;;  %v1761_v38 = vadd.f32 %v1760_v49, %v1755_v16  ;;  %v1770_v47 = vadd.f32 %v1769_v59, %v1764_v26  ;;  %v1779_v29 = vadd.f32 %v1778_v24, %v1773_v32 }
 0x59a   :  { %v1797_v34 = vadd.f32 %v1796_v6, %v1791_v54  ;;  %v1806_v44 = vadd.f32 %v1805_v62, %v1800_v35  ;;  %v1815_v42 = vadd.f32 %v1814_v37, %v1809_v23  ;;  %v1824_v0 = vadd.f32 %v1823_v30, %v1818_v31 }
 0x59b   :  { %vm1828_vm15 = vcmp.gt.f32.partialorder %v1788_v9, 0.0  ;;  %v1836_v22 = vmul.f32 0.2, %v1788_v9  ;;  %vm1825_vm3 = vcmp.gt.f32.partialorder %v1761_v38, 0.0  ;;  %v1833_v3 = vmul.f32 0.2, %v1761_v38 }
 0x59c   :  { %vm1826_vm8 = vcmp.gt.f32.partialorder %v1770_v47, 0.0  ;;  %v1834_v4 = vmul.f32 0.2, %v1770_v47  ;;  %v1835_v18 = vmul.f32 0.2, %v1779_v29  ;;  %vm1827_vm7 = vcmp.gt.f32.partialorder %v1779_v29, 0.0 }
 0x59d   :  { %v1844_v21 = vsel %vm1828_vm15, %v1788_v9, %v1836_v22  ;;  %v1841_v50 = vsel %vm1825_vm3, %v1761_v38, %v1833_v3  ;;  %v1837_v25 = vmul.f32 0.2, %v1797_v34  ;;  %vm1829_vm4 = vcmp.gt.f32.partialorder %v1797_v34, 0.0 }
 0x59e   :  { %v1854_v28 = vsel %vm1850_vm14, %v1844_v21, -1e+30  ;;  %v1851_v7 = vsel %vm1850_vm14, %v1841_v50, -1e+30  ;;  %v1842_v19 = vsel %vm1826_vm8, %v1770_v47, %v1834_v4  ;;  %v1843_v39 = vsel %vm1827_vm7, %v1779_v29, %v1835_v18 }
 0x59f   :  { %v1868_v41 = vsel %vm616_vm5, %v1854_v28, -inf  ;;  %v1859_v15 = vsel %vm616_vm5, %v1851_v7, -inf  ;;  %v1852_v52 = vsel %vm1850_vm14, %v1842_v19, -1e+30  ;;  %v1853_v2 = vsel %vm1850_vm14, %v1843_v39, -1e+30 }
 0x5a0   :  { %1869 = vmax.xlane.f32.xlu1 %v1868_v41  ;;  %1860 = vmax.xlane.f32.xlu0 %v1859_v15  ;;  %v1862_v48 = vsel %vm616_vm5, %v1852_v52, -inf  ;;  %v1845_v1 = vsel %vm1829_vm4, %v1797_v34, %v1837_v25  ;;  %v1838_v13 = vmul.f32 0.2, %v1806_v44  ;;  %vm1830_vm9 = vcmp.gt.f32.partialorder %v1806_v44, 0.0 }
 0x5a1   :  { %v1865_v8 = vsel %vm616_vm5, %v1853_v2, -inf  ;;  %v1855_v56 = vsel %vm1850_vm14, %v1845_v1, -1e+30  ;;  %v1839_v45 = vmul.f32 0.2, %v1815_v42  ;;  %vm1831_vm10 = vcmp.gt.f32.partialorder %v1815_v42, 0.0 }
 0x5a2   :  { %v1846_v51 = vsel %vm1830_vm9, %v1806_v44, %v1838_v13  ;;  %v1871_v5 = vsel %vm616_vm5, %v1855_v56, -inf  ;;  %v1840_v53 = vmul.f32 0.2, %v1824_v0  ;;  %vm1832_vm15 = vcmp.gt.f32.partialorder %v1824_v0, 0.0 }
 0x5a3   :  { %v1856_v17 = vsel %vm1850_vm14, %v1846_v51, -1e+30  ;;  %v1847_v20 = vsel %vm1831_vm10, %v1815_v42, %v1839_v45 }
 0x5a4   :  { %1863 = vmax.xlane.f32.xlu0 %v1862_v48  ;;  %v1874_v27 = vsel %vm616_vm5, %v1856_v17, -inf  ;;  %v1857_v40 = vsel %vm1850_vm14, %v1847_v20, -1e+30  ;;  %v1848_v43 = vsel %vm1832_vm15, %v1824_v0, %v1840_v53 }
 0x5a5   :  { %v1877_v46 = vsel %vm616_vm5, %v1857_v40, -inf  ;;  %v1858_v57 = vsel %vm1850_vm14, %v1848_v43, -1e+30 }
 0x5a6   :  { %v1880_v12 = vsel %vm616_vm5, %v1858_v57, -inf }
 0x5a8   :  { %1866 = vmax.xlane.f32.xlu0 %v1865_v8 }
 0x5ac   :  { %1872 = vmax.xlane.f32.xlu0 %v1871_v5 }
 0x5b0   :  { %1875 = vmax.xlane.f32.xlu0 %v1874_v27 }
 0x5b4   :  { %1878 = vmax.xlane.f32.xlu0 %v1877_v46 }
 0x5b8   :  { %1881 = vmax.xlane.f32.xlu0 %v1880_v12 }
 0x62d   :  { %v1861_v60 = vpop.xlane.xlu0 %1860  ;;  %v1870_v32 = vpop.xlane.xlu1 %1869 }
 0x62e   :  { %v1883_v16 = vsub.f32 %v1851_v7, %v1861_v60  ;;  %v1886_v23 = vsub.f32 %v1854_v28, %v1870_v32 }
 0x630   :  { %v1891_v10 = vmul.f32 1.442695, %v1883_v16  ;;  %v1897_v49 = vmul.f32 1.442695, %v1886_v23 }
 0x631   :  { %v1864_v54 = vpop.xlane.xlu0 %1863 }
 0x632   :  { %v1884_v35 = vsub.f32 %v1852_v52, %v1864_v54  ;;  %2900 = vpow2.f32 %v1891_v10 }
 0x634   :  { %v1893_v31 = vmul.f32 1.442695, %v1884_v35 }
 0x635   :  { %v1867_v63 = vpop.xlane.xlu0 %1866 }
 0x636   :  { %2902 = vpow2.f32 %v1893_v31  ;;  %v1885_v58 = vsub.f32 %v1853_v2, %v1867_v63 }
 0x638   :  { %v1895_v59 = vmul.f32 1.442695, %v1885_v58 }
 0x639   :  { %v1873_v24 = vpop.xlane.xlu0 %1872 }
 0x63a   :  { %2904 = vpow2.f32 %v1895_v59  ;;  %v1887_v26 = vsub.f32 %v1855_v56, %v1873_v24 }
 0x63b   :  { %2906 = vpow2.f32 %v1897_v49 }
 0x63c   :  { %v1899_v6 = vmul.f32 1.442695, %v1887_v26  ;;  %v2901_v9 = vpop.eup %2900 }
 0x63d   :  { %v1876_v38 = vpop.xlane.xlu0 %1875  ;;  %v1907_v29 = vmul.f32 %v2901_v9, %v3788_v61 }
 0x63e   :  { %v1888_v47 = vsub.f32 %v1856_v17, %v1876_v38  ;;  %2908 = vpow2.f32 %v1899_v6 }
 0x63f   :  { %v1915_v4 = vsel %vm616_vm5, %v1907_v29, 0.0 }
 0x640   :  { %v2903_v22 = vpop.eup %2902  ;;  %v1901_v3 = vmul.f32 1.442695, %v1888_v47  ;;  %1916 = vadd.xlane.f32.xlu0 %v1915_v4  ;;  %v2100_v4 = vld [vmem:[%s3955_s15] sm:$0xff] }
 0x641   :  { %v1879_v62 = vpop.xlane.xlu0 %1878  ;;  %v1908_v21 = vmul.f32 %v2903_v22, %v3788_v61 }
 0x642   :  { %2910 = vpow2.f32 %v1901_v3  ;;  %v1889_v50 = vsub.f32 %v1857_v40, %v1879_v62  ;;  %v2101_v62 = vld [vmem:[%s3955_s15 + $0x8] sm:$0xff] }
 0x643   :  { %v1918_v18 = vsel %vm616_vm5, %v1908_v21, 0.0 }
 0x644   :  { %v2905_v34 = vpop.eup %2904  ;;  %v1903_v28 = vmul.f32 1.442695, %v1889_v50  ;;  %1919 = vadd.xlane.f32.xlu0 %v1918_v18  ;;  %v2102_v50 = vld [vmem:[%s3955_s15 + $0x10] sm:$0xff]  ;;  %v2103_v18 = vld [vmem:[%s3955_s15 + $0x18] sm:$0xff] }
 0x645   :  { %v2907_v7 = vpop.eup %2906  ;;  %v1882_v19 = vpop.xlane.xlu0 %1881  ;;  %v1909_v41 = vmul.f32 %v2905_v34, %v3788_v61  ;;  %v2748_v34 = vpack.c.bf16 %v2103_v18, %v2102_v50 }
 0x646   :  { %2912 = vpow2.f32 %v1903_v28  ;;  %v1890_v15 = vsub.f32 %v1858_v57, %v1882_v19  ;;  %v1910_v25 = vmul.f32 %v2907_v7, %v3788_v61 }
 0x647   :  { %v1921_v52 = vsel %vm616_vm5, %v1909_v41, 0.0 }
 0x648   :  { %v1905_v39 = vmul.f32 1.442695, %v1890_v15  ;;  %v2909_v44 = vpop.eup %2908  ;;  %1922 = vadd.xlane.f32.xlu0 %v1921_v52  ;;  %v1924_v48 = vsel %vm616_vm5, %v1910_v25, 0.0 }
 0x649   :  { %v1911_v2 = vmul.f32 %v2909_v44, %v3788_v61 }
 0x64a   :  { %2914 = vpow2.f32 %v1905_v39 }
 0x64b   :  { %v1927_v30 = vsel %vm616_vm5, %v1911_v2, 0.0 }
 0x64c   :  { %v2911_v37 = vpop.eup %2910  ;;  %1925 = vadd.xlane.f32.xlu0 %v1924_v48 }
 0x64d   :  { %v1912_v1 = vmul.f32 %v2911_v37, %v3788_v61 }
 0x64f   :  { %v1930_v13 = vsel %vm616_vm5, %v1912_v1, 0.0 }
 0x650   :  { %v2913_v42 = vpop.eup %2912  ;;  %1931 = vadd.xlane.f32.xlu1 %v1930_v13  ;;  %1928 = vadd.xlane.f32.xlu0 %v1927_v30 }
 0x651   :  { %v1913_v8 = vmul.f32 %v2913_v42, %v3788_v61 }
 0x653   :  { %v1933_v56 = vsel %vm616_vm5, %v1913_v8, 0.0 }
 0x654   :  { %v2915_v51 = vpop.eup %2914  ;;  %1934 = vadd.xlane.f32.xlu0 %v1933_v56  ;;  %v1038_v56 = vmax.f32 %v3777_v55, 0.0 }
 0x655   :  { %v1914_v45 = vmul.f32 %v2915_v51, %v3788_v61  ;;  %v2442_v51 = vld [vmem:[%s3956_s16] ss:$0 sm:$0xff] }
 0x657   :  { %v1936_v0 = vsel %vm616_vm5, %v1914_v45, 0.0 }
 0x658   :  { %1937 = vadd.xlane.f32.xlu1 %v1936_v0 }
 0x6cd   :  { %v1917_v5 = vpop.xlane.xlu0 %1916 }
 0x6ce   :  { %v1939_v17 = vmax.f32 %v1917_v5, 1e-30 }
 0x6d0   :  { %2916 = vrcp.f32 %v1939_v17 }
 0x6d1   :  { %v1920_v20 = vpop.xlane.xlu0 %1919 }
 0x6d2   :  { %v1940_v53 = vmax.f32 %v1920_v20, 1e-30 }
 0x6d4   :  { %2918 = vrcp.f32 %v1940_v53 }
 0x6d5   :  { %v1923_v27 = vpop.xlane.xlu0 %1922 }
 0x6d6   :  { %v1941_v40 = vmax.f32 %v1923_v27, 1e-30 }
 0x6d8   :  { %2920 = vrcp.f32 %v1941_v40 }
 0x6d9   :  { %v1926_v43 = vpop.xlane.xlu0 %1925 }
 0x6da   :  { %v2917_v46 = vpop.eup %2916  ;;  %v1942_v57 = vmax.f32 %v1926_v43, 1e-30 }
 0x6db   :  { %v1948_v12 = vmul.f32 %v2917_v46, %v1907_v29 }
 0x6dc   :  { %2922 = vrcp.f32 %v1942_v57 }
 0x6dd   :  { %v1932_v60 = vpop.xlane.xlu1 %1931  ;;  %2659 = vmatprep.mubr.msk.f32.mxu0 %vm616_vm5, %v1948_v12  ;;  %v1929_v61 = vpop.xlane.xlu0 %1928 }
 0x6de   :  { %v1944_v16 = vmax.f32 %v1932_v60, 1e-30  ;;  %v2919_v32 = vpop.eup %2918  ;;  %v1943_v10 = vmax.f32 %v1929_v61, 1e-30 }
 0x6df   :  { %v1950_v54 = vmul.f32 %v2919_v32, %v1908_v21  ;;  %v2744_v21 = vpack.c.bf16 %v2101_v62, %v2100_v4 }
 0x6e0   :  { %2924 = vrcp.f32 %v1944_v16 }
 0x6e1   :  { %2926 = vrcp.f32 %v1943_v10  ;;  %2660 = vmatmul.mubr.msk.f32.vlgmr.msra.gmra.mrb[22].mxu0 %vm616_vm5, %v1950_v54  ;;  %v1935_v35 = vpop.xlane.xlu0 %1934  ;;  %2745 = vmatprep.subr.bf16.mxu1 %v2744_v21 }
 0x6e2   :  { %v2921_v23 = vpop.eup %2920  ;;  %v1945_v31 = vmax.f32 %v1935_v35, 1e-30  ;;  %2747 = vmatpush3.bf16.msra.mxu1 %v2744_v21 }
 0x6e3   :  { %v1952_v63 = vmul.f32 %v2921_v23, %v1909_v41  ;;  %2749 = vmatprep.subr.bf16.mxu1 %v2748_v34 }
 0x6e4   :  { %2928 = vrcp.f32 %v1945_v31 }
 0x6e5   :  { %v1938_v58 = vpop.xlane.xlu1 %1937  ;;  %2662 = vmatprep.mubr.msk.f32.mxu0 %vm616_vm5, %v1952_v63 }
 0x6e6   :  { %v1946_v49 = vmax.f32 %v1938_v58, 1e-30  ;;  %v2923_v59 = vpop.eup %2922  ;;  %2751 = vmatpush3.bf16.msra.mxu1 %v2748_v34 }
 0x6e7   :  { %v1954_v24 = vmul.f32 %v2923_v59, %v1910_v25  ;;  %2753 = vmatprep.subr.bf16.mxu1 %v2744_v21 }
 0x6e8   :  { %2930 = vrcp.f32 %v1946_v49 }
 0x6e9   :  { %2663 = vmatmul.mubr.msk.f32.gmra.mrb[24].mxu0 %vm616_vm5, %v1954_v24 }
 0x6ea   :  { %v2925_v26 = vpop.eup %2924 }
 0x6eb   :  { %v2927_v6 = vpop.eup %2926  ;;  %v1958_v9 = vmul.f32 %v2925_v26, %v1912_v1 }
 0x6ec   :  { %v1956_v38 = vmul.f32 %v2927_v6, %v1911_v2 }
 0x6ee   :  { %2665 = vmatprep.mubr.msk.f32.mxu0 %vm616_vm5, %v1956_v38  ;;  %v2929_v47 = vpop.eup %2928 }
 0x6ef   :  { %2666 = vmatmul.mubr.msk.f32.gmra.mrb[26].mxu0 %vm616_vm5, %v1958_v9  ;;  %v1960_v29 = vmul.f32 %v2929_v47, %v1913_v8  ;;  %v1037_v8 = vmax.f32 %v3781_v33, 0.0  ;;  %v2203_v9 = vld [vmem:[%s3957_s17] sm:$0x1] }
 0x6f1   :  { %2668 = vmatprep.mubr.msk.f32.mxu0 %vm616_vm5, %v1960_v29 }
 0x6f2   :  { %v2931_v22 = vpop.eup %2930 }
 0x6f3   :  { %v1962_v3 = vmul.f32 %v2931_v22, %v1914_v45 }
 0x6f5   :  { %2669 = vmatmul.mubr.msk.f32.gmra.mrb[28].mxu0 %vm616_vm5, %v1962_v3 }
 0x7b4   :  { %v2661_v28 = vpop.f32.mrb[22].mxu0 }
 0x7b5   :  { %v2053_v7 = vpop.f32.mrb[23].mxu0 }
 0x7b6   :  { %v2092_v19 = vsel %vm1018_vm6, %v2053_v7, %v2661_v28 }
 0x7bc   :  { %v2664_v41 = vpop.f32.mrb[24].mxu0 }
 0x7bd   :  { %v2063_v15 = vpop.f32.mrb[25].mxu0 }
 0x7be   :  { %v2093_v52 = vsel %vm616_vm5, %v2092_v19, %v2063_v15  ;;  %v2349_v19 = vld [vmem:[%s3957_s17] sm:$0x1]  ;;  %s3009_s17 = smov [#allocation2]  }
 0x7bf   :  { %v2094_v39 = vsel %vm1023_vm11, %v2093_v52, %v2664_v41  ;;  %s2373_s23 = sshll.u32 %s3009_s17, 4  ;;  %s2374_s23 = int_to_ptr.vmem [resolvable:$true] %s2373_s23 }
 0x7c0   :  { %s2950_s3 = scalar_lea.vmem %s2374_s23, 128  ;;  %p2955_p1 = scmp.lt.s32.totalorder %s2374_s23, %s2374_s23 }
 0x7c1   :  { %p2951_p0 = scmp.ne.s32.totalorder %s2374_s23, %s2950_s3  ;;  %p2956_p2 = scmp.lt.s32.totalorder %s2950_s3, %s2950_s3 }
 0x7c2   :  { %v2667_v25 = vpop.f32.mrb[26].mxu0 }
 0x7c3   :  { %v2073_v44 = vpop.f32.mrb[27].mxu0  ;;  %p2957_p3 = por %p2956_p2, %p2955_p1 }
 0x7c4   :  { %v2095_v37 = vsel %vm73_vm1, %v2094_v39, %v2073_v44  ;;  %vm2205_vm1 = vcmask 253952  }
 0x7c5   :  { %v2096_v48 = vsel %vm1028_vm12, %v2095_v37, %v2667_v25  ;;  %p2958_p4 = pnand %p2957_p3, %p2951_p0 }
 0x7c8   :  { %v2670_v2 = vpop.f32.mrb[28].mxu0 }
 0x7c9   :  { %v2083_v1 = vpop.f32.mrb[29].mxu0 }
 0x7ca   :  { %v2097_v13 = vsel %vm1031_vm0, %v2096_v48, %v2083_v1 }
 0x7cb   :  { %v3865_v42 = vsel %vm1034_vm13, %v2097_v13, %v2670_v2 }
 0x7cc   :  { %v2099_v30 = vmax.f32 %v3865_v42, 0.0 }
 0x7ce   :  { %2680 = vmatmul.mubr.msk.f32.vlgmr.msra.gmra.mrb[18].mxu1 %vm243_vm2, %v2099_v30 }
 0x7cf   :  { %2755 = vmatpush3.bf16.msra.mxu1 %v2744_v21  ;;  %2690 = vmatprep.mubr.msk.f32.mxu1 %vm243_vm2, %v1037_v8 }
 0x7d0   :  { %2757 = vmatprep.subr.bf16.mxu1 %v2748_v34 }
 0x7d3   :  { %2759 = vmatpush3.bf16.msra.mxu1 %v2748_v34 }
 0x7d6   :  { %2691 = vmatmul.mubr.msk.f32.vlgmr.msra.gmra.mrb[20].mxu1 %vm243_vm2, %v1038_v56 }
 0x8a1   :  { %v2681_v45 = vpop.f32.mrb[18].mxu1 }
 0x8a2   :  { %v2189_v0 = vadd.f32 %v2681_v45, %v2442_v51  ;;  %v2183_v5 = vpop.f32.mrb[19].mxu1 }
 0x8a3   :  { %v2184_v17 = vadd.f32 %v2442_v51, %v2183_v5 }
 0x8a4   :  { %2932 = vtanh.f32 %v2189_v0 }
 0x8a5   :  { %2934 = vtanh.f32 %v2184_v17 }
 0x8a9   :  { %v2692_v20 = vpop.f32.mrb[20].mxu1 }
 0x8aa   :  { %v2333_v53 = vadd.f32 %v2692_v20, %v2442_v51  ;;  %v2327_v27 = vpop.f32.mrb[21].mxu1 }
 0x8ab   :  { %v2328_v40 = vadd.f32 %v2442_v51, %v2327_v27 }
 0x8ac   :  { %2936 = vtanh.f32 %v2333_v53 }
 0x8ad   :  { %2938 = vtanh.f32 %v2328_v40 }
 0x8ae   :  { %v2933_v43 = vpop.eup %2932 }
 0x8af   :  { %v2935_v46 = vpop.eup %2934  ;;  %v2209_v57 = vsel %vm243_vm2, %v2933_v43, 0.0 }
 0x8b0   :  { %v2210_v12 = vrot.slane %v2209_v57, 4  ;;  %v2194_v60 = vsel %vm243_vm2, %v2935_v46, 0.0 }
 0x8b1   :  { %v2195_v16 = vrot.slane %v2194_v60, 4 }
 0x8b2   :  { %v2211_v61 = vadd.f32 %v2210_v12, %v2209_v57 }
 0x8b3   :  { %v2196_v32 = vadd.f32 %v2195_v16, %v2194_v60 }
 0x8b4   :  { %v2212_v10 = vrot.slane %v2211_v61, 2 }
 0x8b5   :  { %v2197_v54 = vrot.slane %v2196_v32, 2 }
 0x8b6   :  { %v2937_v35 = vpop.eup %2936  ;;  %v2213_v23 = vadd.f32 %v2212_v10, %v2211_v61 }
 0x8b7   :  { %v2939_v31 = vpop.eup %2938  ;;  %v2339_v63 = vsel %vm243_vm2, %v2937_v35, 0.0  ;;  %v2198_v58 = vadd.f32 %v2197_v54, %v2196_v32 }
 0x8b8   :  { %v2338_v49 = vsel %vm243_vm2, %v2939_v31, 0.0  ;;  %v2214_v59 = vrot.slane %v2213_v23, 1 }
 0x8b9   :  { %v2199_v24 = vrot.slane %v2198_v58, 1  ;;  %v2340_v26 = vadd.f32 %v2339_v63, %v2338_v49 }
 0x8ba   :  { %v2215_v6 = vadd.f32 %v2214_v59, %v2213_v23 }
 0x8bb   :  { %v2200_v38 = vadd.f32 %v2199_v24, %v2198_v58  ;;  %v2341_v47 = vrot.slane %v2340_v26, 4 }
 0x8bc   :  { %v2216_v29 = vmul.f32 0.125, %v2215_v6 }
 0x8bd   :  { %v2202_v22 = vmul.f32 0.125, %v2200_v38  ;;  %v2342_v3 = vadd.f32 %v2341_v47, %v2340_v26 }
 0x8be   :  { %v2217_v4 = vmul.f32 %v2216_v29, %v2203_v9 }
 0x8bf   :  { %v2204_v62 = vmul.f32 %v2203_v9, %v2202_v22  ;;  %v2343_v21 = vrot.slane %v2342_v3, 2 }
 0x8c0   :  { %v2218_v50 = vsel %vm2205_vm1, %v2217_v4, 0.0 }
 0x8c1   :  { %2219 = vadd.xlane.f32.xlu1 %v2218_v50  ;;  %v2206_v18 = vsel %vm2205_vm1, %v2204_v62, 0.0  ;;  %v2344_v34 = vadd.f32 %v2343_v21, %v2342_v3 }
 0x8c2   :  { %2207 = vadd.xlane.f32.xlu0 %v2206_v18 }
 0x8c3   :  { %v2345_v28 = vrot.slane %v2344_v34, 1 }
 0x8c5   :  { %v2346_v7 = vadd.f32 %v2345_v28, %v2344_v34 }
 0x8c7   :  { %v2348_v41 = vmul.f32 0.0625, %v2346_v7 }
 0x8c9   :  { %v2350_v15 = vmul.f32 %v2349_v19, %v2348_v41 }
 0x8cb   :  { %v2351_v52 = vsel %vm2205_vm1, %v2350_v15, 0.0 }
 0x8cc   :  { %2352 = vadd.xlane.f32.xlu0 %v2351_v52 }
 0x94e   :  { %v2220_v39 = vpop.xlane.xlu1 %2219 }
 0x94f   :  { %v2208_v25 = vpop.xlane.xlu0 %2207 }
 0x950   :  { %v2221_v44 = vmax.f32 %v2208_v25, %v2220_v39 }
 0x952   :  { %v2222_v37 = vsub.f32 %v2208_v25, %v2221_v44  ;;  %v2225_v48 = vsub.f32 %v2220_v39, %v2221_v44 }
 0x954   :  { %v2223_v2 = vmul.f32 1.442695, %v2222_v37  ;;  %v2226_v1 = vmul.f32 1.442695, %v2225_v48 }
 0x956   :  { %2940 = vpow2.f32 %v2223_v2 }
 0x957   :  { %2942 = vpow2.f32 %v2226_v1 }
 0x959   :  { %v2353_v13 = vpop.xlane.xlu0 %2352 }
 0x95a   :  { %v2354_v51 = vsub.f32 %v2353_v13, %v2353_v13 }
 0x95c   :  { %v2355_v45 = vmul.f32 1.442695, %v2354_v51 }
 0x95e   :  { %2944 = vpow2.f32 %v2355_v45 }
 0x960   :  { %v2941_v0 = vpop.eup %2940 }
 0x961   :  { %v2943_v5 = vpop.eup %2942 }
 0x962   :  { %v2228_v17 = vadd.f32 %v2943_v5, %v2941_v0 }
 0x964   :  { %2946 = vrcp.f32 %v2228_v17 }
 0x968   :  { %v2945_v20 = vpop.eup %2944 }
 0x969   :  { %2948 = vrcp.f32 %v2945_v20 }
 0x96e   :  { %v2947_v53 = vpop.eup %2946 }
 0x96f   :  { %v2230_v27 = vmul.f32 %v2947_v53, %v2941_v0  ;;  %v2236_v40 = vmul.f32 %v2947_v53, %v2943_v5 }
 0x971   :  { %v2234_v43 = vrot.slane %v2230_v27, %v3251_v14  ;;  %v2240_v46 = vrot.slane %v2236_v40, %v3251_v14 }
 0x973   :  { %v2949_v57 = vpop.eup %2948  ;;  %v2235_v12 = vmul.f32 %v2234_v43, %v1571_v11  ;;  %v2241_v60 = vmul.f32 %v2240_v46, %v2099_v30 }
 0x974   :  { %v2358_v16 = vmul.f32 %v2949_v57, %v2945_v20 }
 0x975   :  { %v2242_v61 = vadd.f32 %v2241_v60, %v2235_v12 }
 0x976   :  { %v2362_v32 = vrot.slane %v2358_v16, %v3251_v14 }
 0x977   :  { %2243 = vst.msk [vmem:[#allocation2] sm:$0xff] %vm243_vm2, %v2242_v61 }
 0x978   :  { %2961 = shalt.err (!%p2958_p4)
}
 0x979   :  { %s2962_s5 = scalar_lea.hbm %s3958_s18, 128 }
 0x97a   :  { %p2963_p5 = scmp.ne.s32.totalorder %s3958_s18, %s2962_s5  ;;  %p2966_p6 = scmp.lt.u32.totalorder %s2962_s5, %s3958_s18 }
 0x97c   :  { %p2968_p7 = pnand %p2966_p6, %p2963_p5 }
 0x97e   :  { %2971 = shalt.err (!%p2968_p7)
}
 0x97f   :  { %2376 = dma.vmem_to_hbm [thread:$0]  %s2374_s23, 128, %s3958_s18, [#allocation3]   ;;  %v2363_v14 = vmul.f32 %v2362_v32, %v1037_v8  ;;  %v2364_v36 = vmul.f32 %v2362_v32, %v1038_v56 }
 0x980   :  { %s2972_s4 = scalar_lea.vmem %s3903_s25, 256  ;;  %p2977_p9 = scmp.lt.s32.totalorder %s3903_s25, %s3903_s25 }
 0x981   :  { %2365 = vst.msk [vmem:[#allocation4] sm:$0xff] %vm243_vm2, %v2363_v14  ;;  %2366 = vst.msk [vmem:[#allocation4 + $0x8] sm:$0xff] %vm243_vm2, %v2364_v36  ;;  %p2973_p8 = scmp.ne.s32.totalorder %s3903_s25, %s2972_s4  ;;  %p2978_p10 = scmp.lt.s32.totalorder %s2972_s4, %s2972_s4 }
 0x983   :  { %p2979_p11 = por %p2978_p10, %p2977_p9 }
 0x985   :  { %p2980_p12 = pnand %p2979_p11, %p2973_p8 }
 0x987   :  { %2983 = shalt.err (!%p2980_p12)
}
 0x988   :  { %s2984_s30 = scalar_lea.hbm %s3959_s19, 256 }
 0x989   :  { %p2985_p13 = scmp.ne.s32.totalorder %s3959_s19, %s2984_s30  ;;  %p2988_p0 = scmp.lt.u32.totalorder %s2984_s30, %s3959_s19 }
 0x98b   :  { %p2990_p1 = pnand %p2988_p0, %p2985_p13 }
 0x98d   :  { %2993 = shalt.err (!%p2990_p1)
}
 0x98e   :  { %s3011_s6 = smov 128   ;;  %s3012_s22 = smov 8  }
 0x98f   :  { %2388 = dma.vmem_to_hbm [thread:$0]  %s3903_s25, 256, %s3959_s19, [#allocation5], %s3011_s6, %s3011_s6, %s3012_s22  }
 0x990   :  { %2994 = dma.done.wait [#allocation3], 128  }
 0x991   :  { %2995 = vsyncadd [#allocation3], 4294967168 }
 0x992   :  { %2996 = dma.done.wait [#allocation5], 256  }
 0x993   :  { %2997 = vsyncadd [#allocation5], 4294967040 }
 0x994   :  { %2395 = vsyncpa [#allocation3], 1 }
 0x995   :  { %2396 = vsyncpa [#allocation5], 1 }

</bundles_post_ra>
